<compile_context>
chip_gen: v7x
topology: tpu7x:2x2x1
jax: 0.10.0
libtpu: 0.0.40
codegen_flags: <defaults>
</compile_context>

<pallas_src>
import functools

import jax
import jax.numpy as jnp
from jax import lax
from jax.experimental import pallas as pl
from jax.experimental.pallas import tpu as pltpu


def _transformer_block_kernel(x_ref, gamma_ref, beta_ref, wqkv_ref, bqkv_ref,
                              wo_ref, bo_ref, o_ref, ohead_ref, *,
                              b_blk, seq_len, num_heads, head_dim):
    """One batch block of B_blk elements.

    x_ref     : [B_blk, S, D]   input tokens
    gamma_ref : [1, D]          LayerNorm scale
    beta_ref  : [1, D]          LayerNorm shift
    wqkv_ref  : [D, 3*D]        fused QKV weight (matmul form)
    bqkv_ref  : [1, 3*D]        fused QKV bias
    wo_ref    : [D, D]          output-projection weight (matmul form)
    bo_ref    : [1, D]          output-projection bias
    o_ref     : [B_blk, S, D]   output (x + attention)
    ohead_ref : [B_blk*S, D]    VMEM scratch holding concatenated head outputs
    """
    D = num_heads * head_dim
    S = seq_len
    M = b_blk * S

    # ---- flatten the batch block: token-wise math is shared across batch ----
    x = x_ref[...].reshape(M, D)

    # ---- LayerNorm over hidden dim (PyTorch default: eps=1e-5, biased var) ----
    mean = jnp.mean(x, axis=-1, keepdims=True)
    xc = x - mean
    var = jnp.mean(xc * xc, axis=-1, keepdims=True)
    xn = xc * lax.rsqrt(var + 1e-5)
    xn = xn * gamma_ref[...] + beta_ref[...]

    # ---- fused QKV projection: ONE wide MXU matmul over all B_blk*S rows ----
    qkv = jnp.dot(xn, wqkv_ref[...],
                  preferred_element_type=jnp.float32) + bqkv_ref[...]
    q = qkv[:, 0 * D:1 * D]
    k = qkv[:, 1 * D:2 * D]
    v = qkv[:, 2 * D:3 * D]

    scale = 1.0 / float(head_dim) ** 0.5

    # ---- per-(batch, head) attention; heads written into the [M, D] scratch --
    # Static Python loops: b_blk and num_heads are tiny at these shapes.
    # TODO(synk): for large S / H switch to lax.fori_loop or an extra grid axis
    # (flash-style KV tiling) to bound live ranges of the [S, S] score tensors
    # and keep VMEM under the v7x 64 MiB budget.
    for b in range(b_blk):
        r0 = b * S
        for h in range(num_heads):
            lo = h * head_dim
            hi = lo + head_dim
            qh = q[r0:r0 + S, lo:hi] * scale      # scale folded into Q (S*dh muls)
            kh = k[r0:r0 + S, lo:hi]
            vh = v[r0:r0 + S, lo:hi]
            # scores = (Q_h * scale) K_h^T  (contract head_dim of both)
            s = lax.dot_general(qh, kh, (((1,), (1,)), ((), ())),
                                preferred_element_type=jnp.float32)
            s = s - jnp.max(s, axis=-1, keepdims=True)
            p = jnp.exp(s)
            inv_l = pl.reciprocal(jnp.sum(p, axis=-1, keepdims=True), approx=True)
            # softmax normalization commuted onto the (much smaller) PV output
            oh = jnp.dot(p, vh, preferred_element_type=jnp.float32) * inv_l
            ohead_ref[r0:r0 + S, lo:hi] = oh

    # ---- ONE K=D output-projection matmul (instead of H tiny K=dh matmuls) ----
    attn = jnp.dot(ohead_ref[...], wo_ref[...],
                   preferred_element_type=jnp.float32) + bo_ref[...]

    # ---- residual, restore block layout ----
    o_ref[...] = (x + attn).reshape(b_blk, S, D).astype(o_ref.dtype)


def _pick_batch_block(batch):
    """Largest divisor of `batch` that still leaves >= 2 grid steps (v7x megacore)."""
    if batch <= 1:
        return 1
    for d in range(batch // 2, 0, -1):
        if batch % d == 0:
            return d
    return 1


def transformer_channel_mixer_pallas(x, gamma, beta, w_qkv, b_qkv, w_o, b_o,
                                     num_heads, b_blk=None):
    """x: [B, C, CH, T].  Returns [B, C, CH, T]."""
    B, C, CH, T = x.shape
    D = C
    S = T * CH
    assert D % num_heads == 0
    head_dim = D // num_heads

    if b_blk is None:
        b_blk = _pick_batch_block(B)
    assert B % b_blk == 0
    num_blocks = B // b_blk

    # rearrange 'b c ch t -> b (t ch) c'  (module-boundary layout, plain JAX)
    # TODO(synk): for production shapes (S >> 128 >> D) a [D, S] lane-dense
    # kernel layout would avoid masked vst on the D=32-wide output.
    xs = jnp.transpose(x, (0, 3, 2, 1)).reshape(B, S, D)

    gamma2 = gamma.reshape(1, D)
    beta2 = beta.reshape(1, D)
    bqkv2 = b_qkv.reshape(1, 3 * D)
    bo2 = b_o.reshape(1, D)

    kernel = functools.partial(_transformer_block_kernel, b_blk=b_blk,
                               seq_len=S, num_heads=num_heads, head_dim=head_dim)

    y = pl.pallas_call(
        kernel,
        out_shape=jax.ShapeDtypeStruct((B, S, D), x.dtype),
        grid_spec=pltpu.PrefetchScalarGridSpec(
            num_scalar_prefetch=0,
            grid=(num_blocks,),                    # >= 2 steps (megacore on v7x)
            in_specs=[
                pl.BlockSpec((b_blk, S, D), lambda i: (i, 0, 0)),   # x block
                pl.BlockSpec((1, D), lambda i: (0, 0)),             # gamma
                pl.BlockSpec((1, D), lambda i: (0, 0)),             # beta
                pl.BlockSpec((D, 3 * D), lambda i: (0, 0)),         # W_qkv (resident)
                pl.BlockSpec((1, 3 * D), lambda i: (0, 0)),         # b_qkv
                pl.BlockSpec((D, D), lambda i: (0, 0)),             # W_o   (resident)
                pl.BlockSpec((1, D), lambda i: (0, 0)),             # b_o
            ],
            out_specs=pl.BlockSpec((b_blk, S, D), lambda i: (i, 0, 0)),
            scratch_shapes=[pltpu.VMEM((b_blk * S, D), jnp.float32)],  # head outputs
        ),
        compiler_params=pltpu.CompilerParams(
            dimension_semantics=("parallel",),
            # Safe on all generations (raises v5e's 16 MiB scoped default,
            # <= v7x's 32 MiB default / 64 MiB physical).  Buffers here are tiny.
            vmem_limit_bytes=32 * 1024 * 1024,
        ),
    )(xs, gamma2, beta2, w_qkv, bqkv2, w_o, bo2)

    # rearrange back 'b (t ch) c -> b c ch t'
    return jnp.transpose(y.reshape(B, T, CH, D), (0, 3, 2, 1))


def transformer_channel_mixer_ref(x, gamma, beta, w_qkv, b_qkv, w_o, b_o, num_heads):
    """Pure-JAX reference matching the PyTorch forward (canonical MHSA)."""
    B, C, CH, T = x.shape
    D = C
    S = T * CH
    dh = D // num_heads

    xs = jnp.transpose(x, (0, 3, 2, 1)).reshape(B, S, D)

    mean = xs.mean(-1, keepdims=True)
    var = ((xs - mean) ** 2).mean(-1, keepdims=True)
    xn = (xs - mean) / jnp.sqrt(var + 1e-5) * gamma + beta

    qkv = xn @ w_qkv + b_qkv
    q, k, v = jnp.split(qkv, 3, axis=-1)
    qh = q.reshape(B, S, num_heads, dh).transpose(0, 2, 1, 3)
    kh = k.reshape(B, S, num_heads, dh).transpose(0, 2, 1, 3)
    vh = v.reshape(B, S, num_heads, dh).transpose(0, 2, 1, 3)

    s = jnp.einsum('bhqd,bhkd->bhqk', qh, kh) / jnp.sqrt(dh)
    p = jax.nn.softmax(s, axis=-1)
    o = jnp.einsum('bhqk,bhkd->bhqd', p, vh)
    o = o.transpose(0, 2, 1, 3).reshape(B, S, D)
    attn = o @ w_o + b_o

    y = xs + attn
    return jnp.transpose(y.reshape(B, T, CH, D), (0, 3, 2, 1))


if __name__ == "__main__":
    # Small shapes consistent with the module: hidden_dims=C=32, num_heads=4,
    # batch=2, ch=4, t=8  ->  sequence length t*ch = 32.
    B, C, CH, T = 2, 32, 4, 8
    num_heads = 4

    key = jax.random.PRNGKey(0)
    kx, kg, kb, kwq, kbq, kwo, kbo = jax.random.split(key, 7)

    x = jax.random.normal(kx, (B, C, CH, T), dtype=jnp.float32)
    # Deterministic synthetic module parameters (matmul-form weights [in, out]).
    gamma = 1.0 + 0.1 * jax.random.normal(kg, (C,), dtype=jnp.float32)
    beta = 0.1 * jax.random.normal(kb, (C,), dtype=jnp.float32)
    w_qkv = 0.1 * jax.random.normal(kwq, (C, 3 * C), dtype=jnp.float32)
    b_qkv = 0.1 * jax.random.normal(kbq, (3 * C,), dtype=jnp.float32)
    w_o = 0.1 * jax.random.normal(kwo, (C, C), dtype=jnp.float32)
    b_o = 0.1 * jax.random.normal(kbo, (C,), dtype=jnp.float32)

    out = transformer_channel_mixer_pallas(x, gamma, beta, w_qkv, b_qkv, w_o, b_o, num_heads)
    out = jax.block_until_ready(out)

    ref = transformer_channel_mixer_ref(x, gamma, beta, w_qkv, b_qkv, w_o, b_o, num_heads)
    assert out.shape == (B, C, CH, T), out.shape
    max_err = float(jnp.max(jnp.abs(out - ref)))
    # Tolerance loosened slightly vs 1e-4 because the softmax denominator uses
    # the EUP approximate reciprocal (pl.reciprocal(approx=True)).
    assert jnp.allclose(out, ref, atol=2e-3, rtol=2e-3), max_err

    print("KERNEL_OK")
</pallas_src>

<mosaic_0001>
module attributes {stable_mosaic.version = 11 : i64} {
  func.func @_transformer_block_kernel(%arg0: i32, %arg1: memref<1x32x32xf32, #tpu.memory_space<vmem>>, %arg2: memref<1x32xf32, #tpu.memory_space<vmem>>, %arg3: memref<1x32xf32, #tpu.memory_space<vmem>>, %arg4: memref<32x96xf32, #tpu.memory_space<vmem>>, %arg5: memref<1x96xf32, #tpu.memory_space<vmem>>, %arg6: memref<32x32xf32, #tpu.memory_space<vmem>>, %arg7: memref<1x32xf32, #tpu.memory_space<vmem>>, %arg8: memref<1x32x32xf32, #tpu.memory_space<vmem>>, %arg9: memref<32x32xf32, #tpu.memory_space<vmem>>) attributes {dimension_semantics = [#tpu.dimension_semantics<parallel>], iteration_bounds = array<i64: 2>, scalar_prefetch = 0 : i64, scratch_operands = 1 : i64, tpu.core_type = #tpu.core_type<tc>, window_params = [{transform_indices = @transform_0, window_bounds = array<i64: 1, 32, 32>}, {pipeline_mode = #tpu.pipeline_mode<synchronous>, transform_indices = @transform_1, window_bounds = array<i64: 1, 32>}, {pipeline_mode = #tpu.pipeline_mode<synchronous>, transform_indices = @transform_2, window_bounds = array<i64: 1, 32>}, {pipeline_mode = #tpu.pipeline_mode<synchronous>, transform_indices = @transform_3, window_bounds = array<i64: 32, 96>}, {pipeline_mode = #tpu.pipeline_mode<synchronous>, transform_indices = @transform_4, window_bounds = array<i64: 1, 96>}, {pipeline_mode = #tpu.pipeline_mode<synchronous>, transform_indices = @transform_5, window_bounds = array<i64: 32, 32>}, {pipeline_mode = #tpu.pipeline_mode<synchronous>, transform_indices = @transform_6, window_bounds = array<i64: 1, 32>}, {transform_indices = @transform_7, window_bounds = array<i64: 1, 32, 32>}]} {
    %c0 = arith.constant 0 : index
    %c0_0 = arith.constant 0 : index
    %c0_1 = arith.constant 0 : index
    %0 = vector.load %arg1[%c0, %c0_0, %c0_1] : memref<1x32x32xf32, #tpu.memory_space<vmem>>, vector<1x32x32xf32>
    %1 = vector.shape_cast %0 : vector<1x32x32xf32> to vector<32x32xf32>
    %cst = arith.constant dense<0.000000e+00> : vector<32xf32>
    %2 = vector.multi_reduction <add>, %1, %cst [1] : vector<32x32xf32> to vector<32xf32>
    %3 = vector.shape_cast %2 : vector<32xf32> to vector<32x1xf32>
    %cst_2 = arith.constant 3.200000e+01 : f32
    %4 = vector.broadcast %cst_2 : f32 to vector<32x1xf32>
    %5 = arith.divf %3, %4 : vector<32x1xf32>
    %6 = vector.broadcast %5 : vector<32x1xf32> to vector<32x32xf32>
    %7 = arith.subf %1, %6 : vector<32x32xf32>
    %8 = arith.mulf %7, %7 : vector<32x32xf32>
    %cst_3 = arith.constant dense<0.000000e+00> : vector<32xf32>
    %9 = vector.multi_reduction <add>, %8, %cst_3 [1] : vector<32x32xf32> to vector<32xf32>
    %10 = vector.shape_cast %9 : vector<32xf32> to vector<32x1xf32>
    %cst_4 = arith.constant 3.200000e+01 : f32
    %11 = vector.broadcast %cst_4 : f32 to vector<32x1xf32>
    %12 = arith.divf %10, %11 : vector<32x1xf32>
    %cst_5 = arith.constant 9.99999974E-6 : f32
    %13 = vector.broadcast %cst_5 : f32 to vector<32x1xf32>
    %14 = arith.addf %12, %13 : vector<32x1xf32>
    %15 = math.rsqrt %14 : vector<32x1xf32>
    %16 = vector.broadcast %15 : vector<32x1xf32> to vector<32x32xf32>
    %17 = arith.mulf %7, %16 : vector<32x32xf32>
    %c0_6 = arith.constant 0 : index
    %c0_7 = arith.constant 0 : index
    %18 = vector.load %arg2[%c0_6, %c0_7] : memref<1x32xf32, #tpu.memory_space<vmem>>, vector<1x32xf32>
    %19 = vector.broadcast %18 : vector<1x32xf32> to vector<32x32xf32>
    %20 = arith.mulf %17, %19 : vector<32x32xf32>
    %c0_8 = arith.constant 0 : index
    %c0_9 = arith.constant 0 : index
    %21 = vector.load %arg3[%c0_8, %c0_9] : memref<1x32xf32, #tpu.memory_space<vmem>>, vector<1x32xf32>
    %22 = vector.broadcast %21 : vector<1x32xf32> to vector<32x32xf32>
    %23 = arith.addf %20, %22 : vector<32x32xf32>
    %c0_10 = arith.constant 0 : index
    %c0_11 = arith.constant 0 : index
    %24 = vector.load %arg4[%c0_10, %c0_11] : memref<32x96xf32, #tpu.memory_space<vmem>>, vector<32x96xf32>
    %cst_12 = arith.constant dense<0.000000e+00> : vector<32x96xf32>
    %25 = tpu.matmul %23, %24, %cst_12 {dimension_numbers = #tpu.dot_dimension_numbers<[1], [0], [0], [1], [0, 0, 1, 1], [], []>} : vector<32x32xf32>, vector<32x96xf32>, vector<32x96xf32> -> vector<32x96xf32>
    %c0_13 = arith.constant 0 : index
    %c0_14 = arith.constant 0 : index
    %26 = vector.load %arg5[%c0_13, %c0_14] : memref<1x96xf32, #tpu.memory_space<vmem>>, vector<1x96xf32>
    %27 = vector.broadcast %26 : vector<1x96xf32> to vector<32x96xf32>
    %28 = arith.addf %25, %27 : vector<32x96xf32>
    %29 = vector.extract_strided_slice %28 {offsets = [0, 0], sizes = [32, 32], strides = [1, 1]} : vector<32x96xf32> to vector<32x32xf32>
    %30 = vector.extract_strided_slice %28 {offsets = [0, 32], sizes = [32, 32], strides = [1, 1]} : vector<32x96xf32> to vector<32x32xf32>
    %31 = vector.extract_strided_slice %28 {offsets = [0, 64], sizes = [32, 32], strides = [1, 1]} : vector<32x96xf32> to vector<32x32xf32>
    %32 = vector.extract_strided_slice %29 {offsets = [0, 0], sizes = [32, 8], strides = [1, 1]} : vector<32x32xf32> to vector<32x8xf32>
    %cst_15 = arith.constant 0.353553385 : f32
    %33 = vector.broadcast %cst_15 : f32 to vector<32x8xf32>
    %34 = arith.mulf %32, %33 : vector<32x8xf32>
    %35 = vector.extract_strided_slice %30 {offsets = [0, 0], sizes = [32, 8], strides = [1, 1]} : vector<32x32xf32> to vector<32x8xf32>
    %36 = vector.extract_strided_slice %31 {offsets = [0, 0], sizes = [32, 8], strides = [1, 1]} : vector<32x32xf32> to vector<32x8xf32>
    %cst_16 = arith.constant dense<0.000000e+00> : vector<32x32xf32>
    %37 = tpu.matmul %34, %35, %cst_16 {dimension_numbers = #tpu.dot_dimension_numbers<[1], [1], [0], [0], [0, 0, 1, 0], [], []>} : vector<32x8xf32>, vector<32x8xf32>, vector<32x32xf32> -> vector<32x32xf32>
    %cst_17 = arith.constant dense<0xFF800000> : vector<32xf32>
    %38 = vector.multi_reduction <maximumf>, %37, %cst_17 [1] : vector<32x32xf32> to vector<32xf32>
    %39 = vector.shape_cast %38 : vector<32xf32> to vector<32x1xf32>
    %40 = vector.broadcast %39 : vector<32x1xf32> to vector<32x32xf32>
    %41 = arith.subf %37, %40 : vector<32x32xf32>
    %42 = math.exp %41 : vector<32x32xf32>
    %cst_18 = arith.constant dense<0.000000e+00> : vector<32xf32>
    %43 = vector.multi_reduction <add>, %42, %cst_18 [1] : vector<32x32xf32> to vector<32xf32>
    %44 = vector.shape_cast %43 : vector<32xf32> to vector<32x1xf32>
    %45 = tpu.reciprocal %44 {approx = true} : vector<32x1xf32> -> vector<32x1xf32>
    %cst_19 = arith.constant dense<0.000000e+00> : vector<32x8xf32>
    %46 = tpu.matmul %42, %36, %cst_19 {dimension_numbers = #tpu.dot_dimension_numbers<[1], [0], [0], [1], [0, 0, 1, 1], [], []>} : vector<32x32xf32>, vector<32x8xf32>, vector<32x8xf32> -> vector<32x8xf32>
    %47 = vector.broadcast %45 : vector<32x1xf32> to vector<32x8xf32>
    %48 = arith.mulf %46, %47 : vector<32x8xf32>
    %c0_20 = arith.constant 0 : index
    %c0_21 = arith.constant 0 : index
    %49 = vector.load %arg9[%c0_20, %c0_21] : memref<32x32xf32, #tpu.memory_space<vmem>>, vector<32x8xf32>
    tpu.vector_store %arg9[%c0_20, %c0_21], %48 {strides = array<i32>} : memref<32x32xf32, #tpu.memory_space<vmem>>, vector<32x8xf32>,
    %50 = vector.extract_strided_slice %29 {offsets = [0, 8], sizes = [32, 8], strides = [1, 1]} : vector<32x32xf32> to vector<32x8xf32>
    %cst_22 = arith.constant 0.353553385 : f32
    %51 = vector.broadcast %cst_22 : f32 to vector<32x8xf32>
    %52 = arith.mulf %50, %51 : vector<32x8xf32>
    %53 = vector.extract_strided_slice %30 {offsets = [0, 8], sizes = [32, 8], strides = [1, 1]} : vector<32x32xf32> to vector<32x8xf32>
    %54 = vector.extract_strided_slice %31 {offsets = [0, 8], sizes = [32, 8], strides = [1, 1]} : vector<32x32xf32> to vector<32x8xf32>
    %cst_23 = arith.constant dense<0.000000e+00> : vector<32x32xf32>
    %55 = tpu.matmul %52, %53, %cst_23 {dimension_numbers = #tpu.dot_dimension_numbers<[1], [1], [0], [0], [0, 0, 1, 0], [], []>} : vector<32x8xf32>, vector<32x8xf32>, vector<32x32xf32> -> vector<32x32xf32>
    %cst_24 = arith.constant dense<0xFF800000> : vector<32xf32>
    %56 = vector.multi_reduction <maximumf>, %55, %cst_24 [1] : vector<32x32xf32> to vector<32xf32>
    %57 = vector.shape_cast %56 : vector<32xf32> to vector<32x1xf32>
    %58 = vector.broadcast %57 : vector<32x1xf32> to vector<32x32xf32>
    %59 = arith.subf %55, %58 : vector<32x32xf32>
    %60 = math.exp %59 : vector<32x32xf32>
    %cst_25 = arith.constant dense<0.000000e+00> : vector<32xf32>
    %61 = vector.multi_reduction <add>, %60, %cst_25 [1] : vector<32x32xf32> to vector<32xf32>
    %62 = vector.shape_cast %61 : vector<32xf32> to vector<32x1xf32>
    %63 = tpu.reciprocal %62 {approx = true} : vector<32x1xf32> -> vector<32x1xf32>
    %cst_26 = arith.constant dense<0.000000e+00> : vector<32x8xf32>
    %64 = tpu.matmul %60, %54, %cst_26 {dimension_numbers = #tpu.dot_dimension_numbers<[1], [0], [0], [1], [0, 0, 1, 1], [], []>} : vector<32x32xf32>, vector<32x8xf32>, vector<32x8xf32> -> vector<32x8xf32>
    %65 = vector.broadcast %63 : vector<32x1xf32> to vector<32x8xf32>
    %66 = arith.mulf %64, %65 : vector<32x8xf32>
    %c0_27 = arith.constant 0 : index
    %c8 = arith.constant 8 : index
    %67 = vector.load %arg9[%c0_27, %c8] : memref<32x32xf32, #tpu.memory_space<vmem>>, vector<32x8xf32>
    tpu.vector_store %arg9[%c0_27, %c8], %66 {strides = array<i32>} : memref<32x32xf32, #tpu.memory_space<vmem>>, vector<32x8xf32>,
    %68 = vector.extract_strided_slice %29 {offsets = [0, 16], sizes = [32, 8], strides = [1, 1]} : vector<32x32xf32> to vector<32x8xf32>
    %cst_28 = arith.constant 0.353553385 : f32
    %69 = vector.broadcast %cst_28 : f32 to vector<32x8xf32>
    %70 = arith.mulf %68, %69 : vector<32x8xf32>
    %71 = vector.extract_strided_slice %30 {offsets = [0, 16], sizes = [32, 8], strides = [1, 1]} : vector<32x32xf32> to vector<32x8xf32>
    %72 = vector.extract_strided_slice %31 {offsets = [0, 16], sizes = [32, 8], strides = [1, 1]} : vector<32x32xf32> to vector<32x8xf32>
    %cst_29 = arith.constant dense<0.000000e+00> : vector<32x32xf32>
    %73 = tpu.matmul %70, %71, %cst_29 {dimension_numbers = #tpu.dot_dimension_numbers<[1], [1], [0], [0], [0, 0, 1, 0], [], []>} : vector<32x8xf32>, vector<32x8xf32>, vector<32x32xf32> -> vector<32x32xf32>
    %cst_30 = arith.constant dense<0xFF800000> : vector<32xf32>
    %74 = vector.multi_reduction <maximumf>, %73, %cst_30 [1] : vector<32x32xf32> to vector<32xf32>
    %75 = vector.shape_cast %74 : vector<32xf32> to vector<32x1xf32>
    %76 = vector.broadcast %75 : vector<32x1xf32> to vector<32x32xf32>
    %77 = arith.subf %73, %76 : vector<32x32xf32>
    %78 = math.exp %77 : vector<32x32xf32>
    %cst_31 = arith.constant dense<0.000000e+00> : vector<32xf32>
    %79 = vector.multi_reduction <add>, %78, %cst_31 [1] : vector<32x32xf32> to vector<32xf32>
    %80 = vector.shape_cast %79 : vector<32xf32> to vector<32x1xf32>
    %81 = tpu.reciprocal %80 {approx = true} : vector<32x1xf32> -> vector<32x1xf32>
    %cst_32 = arith.constant dense<0.000000e+00> : vector<32x8xf32>
    %82 = tpu.matmul %78, %72, %cst_32 {dimension_numbers = #tpu.dot_dimension_numbers<[1], [0], [0], [1], [0, 0, 1, 1], [], []>} : vector<32x32xf32>, vector<32x8xf32>, vector<32x8xf32> -> vector<32x8xf32>
    %83 = vector.broadcast %81 : vector<32x1xf32> to vector<32x8xf32>
    %84 = arith.mulf %82, %83 : vector<32x8xf32>
    %c0_33 = arith.constant 0 : index
    %c16 = arith.constant 16 : index
    %85 = vector.load %arg9[%c0_33, %c16] : memref<32x32xf32, #tpu.memory_space<vmem>>, vector<32x8xf32>
    tpu.vector_store %arg9[%c0_33, %c16], %84 {strides = array<i32>} : memref<32x32xf32, #tpu.memory_space<vmem>>, vector<32x8xf32>,
    %86 = vector.extract_strided_slice %29 {offsets = [0, 24], sizes = [32, 8], strides = [1, 1]} : vector<32x32xf32> to vector<32x8xf32>
    %cst_34 = arith.constant 0.353553385 : f32
    %87 = vector.broadcast %cst_34 : f32 to vector<32x8xf32>
    %88 = arith.mulf %86, %87 : vector<32x8xf32>
    %89 = vector.extract_strided_slice %30 {offsets = [0, 24], sizes = [32, 8], strides = [1, 1]} : vector<32x32xf32> to vector<32x8xf32>
    %90 = vector.extract_strided_slice %31 {offsets = [0, 24], sizes = [32, 8], strides = [1, 1]} : vector<32x32xf32> to vector<32x8xf32>
    %cst_35 = arith.constant dense<0.000000e+00> : vector<32x32xf32>
    %91 = tpu.matmul %88, %89, %cst_35 {dimension_numbers = #tpu.dot_dimension_numbers<[1], [1], [0], [0], [0, 0, 1, 0], [], []>} : vector<32x8xf32>, vector<32x8xf32>, vector<32x32xf32> -> vector<32x32xf32>
    %cst_36 = arith.constant dense<0xFF800000> : vector<32xf32>
    %92 = vector.multi_reduction <maximumf>, %91, %cst_36 [1] : vector<32x32xf32> to vector<32xf32>
    %93 = vector.shape_cast %92 : vector<32xf32> to vector<32x1xf32>
    %94 = vector.broadcast %93 : vector<32x1xf32> to vector<32x32xf32>
    %95 = arith.subf %91, %94 : vector<32x32xf32>
    %96 = math.exp %95 : vector<32x32xf32>
    %cst_37 = arith.constant dense<0.000000e+00> : vector<32xf32>
    %97 = vector.multi_reduction <add>, %96, %cst_37 [1] : vector<32x32xf32> to vector<32xf32>
    %98 = vector.shape_cast %97 : vector<32xf32> to vector<32x1xf32>
    %99 = tpu.reciprocal %98 {approx = true} : vector<32x1xf32> -> vector<32x1xf32>
    %cst_38 = arith.constant dense<0.000000e+00> : vector<32x8xf32>
    %100 = tpu.matmul %96, %90, %cst_38 {dimension_numbers = #tpu.dot_dimension_numbers<[1], [0], [0], [1], [0, 0, 1, 1], [], []>} : vector<32x32xf32>, vector<32x8xf32>, vector<32x8xf32> -> vector<32x8xf32>
    %101 = vector.broadcast %99 : vector<32x1xf32> to vector<32x8xf32>
    %102 = arith.mulf %100, %101 : vector<32x8xf32>
    %c0_39 = arith.constant 0 : index
    %c24 = arith.constant 24 : index
    %103 = vector.load %arg9[%c0_39, %c24] : memref<32x32xf32, #tpu.memory_space<vmem>>, vector<32x8xf32>
    tpu.vector_store %arg9[%c0_39, %c24], %102 {strides = array<i32>} : memref<32x32xf32, #tpu.memory_space<vmem>>, vector<32x8xf32>,
    %c0_40 = arith.constant 0 : index
    %c0_41 = arith.constant 0 : index
    %104 = vector.load %arg9[%c0_40, %c0_41] : memref<32x32xf32, #tpu.memory_space<vmem>>, vector<32x32xf32>
    %c0_42 = arith.constant 0 : index
    %c0_43 = arith.constant 0 : index
    %105 = vector.load %arg6[%c0_42, %c0_43] : memref<32x32xf32, #tpu.memory_space<vmem>>, vector<32x32xf32>
    %cst_44 = arith.constant dense<0.000000e+00> : vector<32x32xf32>
    %106 = tpu.matmul %104, %105, %cst_44 {dimension_numbers = #tpu.dot_dimension_numbers<[1], [0], [0], [1], [0, 0, 1, 1], [], []>} : vector<32x32xf32>, vector<32x32xf32>, vector<32x32xf32> -> vector<32x32xf32>
    %c0_45 = arith.constant 0 : index
    %c0_46 = arith.constant 0 : index
    %107 = vector.load %arg7[%c0_45, %c0_46] : memref<1x32xf32, #tpu.memory_space<vmem>>, vector<1x32xf32>
    %108 = vector.broadcast %107 : vector<1x32xf32> to vector<32x32xf32>
    %109 = arith.addf %106, %108 : vector<32x32xf32>
    %110 = arith.addf %1, %109 : vector<32x32xf32>
    %111 = vector.shape_cast %110 : vector<32x32xf32> to vector<1x32x32xf32>
    %c0_47 = arith.constant 0 : index
    %c0_48 = arith.constant 0 : index
    %c0_49 = arith.constant 0 : index
    %112 = vector.load %arg8[%c0_47, %c0_48, %c0_49] : memref<1x32x32xf32, #tpu.memory_space<vmem>>, vector<1x32x32xf32>
    tpu.vector_store %arg8[%c0_47, %c0_48, %c0_49], %111 {strides = array<i32>} : memref<1x32x32xf32, #tpu.memory_space<vmem>>, vector<1x32x32xf32>,
    return
  }
  func.func @transform_0(%arg0: i32) -> (i32, i32, i32) {
    %c0_i32 = arith.constant 0 : i32
    %c0_i32_0 = arith.constant 0 : i32
    %c0_i32_1 = arith.constant 0 : i32
    return %arg0, %c0_i32, %c0_i32_0 : i32, i32, i32
  }
  func.func @transform_1(%arg0: i32) -> (i32, i32) {
    %c0_i32 = arith.constant 0 : i32
    %c0_i32_0 = arith.constant 0 : i32
    %c0_i32_1 = arith.constant 0 : i32
    return %c0_i32, %c0_i32_0 : i32, i32
  }
  func.func @transform_2(%arg0: i32) -> (i32, i32) {
    %c0_i32 = arith.constant 0 : i32
    %c0_i32_0 = arith.constant 0 : i32
    %c0_i32_1 = arith.constant 0 : i32
    return %c0_i32, %c0_i32_0 : i32, i32
  }
  func.func @transform_3(%arg0: i32) -> (i32, i32) {
    %c0_i32 = arith.constant 0 : i32
    %c0_i32_0 = arith.constant 0 : i32
    %c0_i32_1 = arith.constant 0 : i32
    return %c0_i32, %c0_i32_0 : i32, i32
  }
  func.func @transform_4(%arg0: i32) -> (i32, i32) {
    %c0_i32 = arith.constant 0 : i32
    %c0_i32_0 = arith.constant 0 : i32
    %c0_i32_1 = arith.constant 0 : i32
    return %c0_i32, %c0_i32_0 : i32, i32
  }
  func.func @transform_5(%arg0: i32) -> (i32, i32) {
    %c0_i32 = arith.constant 0 : i32
    %c0_i32_0 = arith.constant 0 : i32
    %c0_i32_1 = arith.constant 0 : i32
    return %c0_i32, %c0_i32_0 : i32, i32
  }
  func.func @transform_6(%arg0: i32) -> (i32, i32) {
    %c0_i32 = arith.constant 0 : i32
    %c0_i32_0 = arith.constant 0 : i32
    %c0_i32_1 = arith.constant 0 : i32
    return %c0_i32, %c0_i32_0 : i32, i32
  }
  func.func @transform_7(%arg0: i32) -> (i32, i32, i32) {
    %c0_i32 = arith.constant 0 : i32
    %c0_i32_0 = arith.constant 0 : i32
    %c0_i32_1 = arith.constant 0 : i32
    return %arg0, %c0_i32, %c0_i32_0 : i32, i32, i32
  }
}

</mosaic_0001>

<bundles_post_ra>
// kernel: tpu_custom_call.1
= control target key start
LH: loop header
LB: loop body
LE: loop exit
PB: predicated region body
PF: predicated region fallthrough
CT: control target
= control target key end

     0   :  { %12 = vsyncpa [#allocation4], 0  ;;  %s3267_s0 = inlined_call_operand.hbm [shape: f32[2,32,32], index: 0, kind: input, shape index: {}]   ;;  %s3268_s1 = inlined_call_operand.vmem [shape: f32[1,32], index: 1, kind: input, shape index: {}]   ;;  %s3269_s2 = inlined_call_operand.vmem [shape: f32[1,32], index: 2, kind: input, shape index: {}]   ;;  %s3270_s3 = inlined_call_operand.hbm [shape: f32[32,96], index: 3, kind: input, shape index: {}]   ;;  %s3271_s4 = inlined_call_operand.vmem [shape: f32[1,96], index: 4, kind: input, shape index: {}]   ;;  %s3272_s5 = inlined_call_operand.hbm [shape: f32[32,32], index: 5, kind: input, shape index: {}]   ;;  %s3273_s6 = inlined_call_operand.vmem [shape: f32[1,32], index: 6, kind: input, shape index: {}]   ;;  %s3274_s7 = inlined_call_operand.hbm [shape: f32[2,32,32], index: 7, kind: output, shape index: {}]  }
   0x1   :  { %14 = vsyncpa [#allocation4 + $0x1], 0 }
   0x2   :  { %15 = vsyncpa [#allocation7], 0 }
   0x3   :  { %16 = vsyncpa [#allocation5], 0 }
   0x4   :  { %18 = vsyncpa [#allocation5 + $0x1], 0  ;;  %s2747_s24 = smov 0   ;;  %s2749_s25 = smov 0  }
   0x5   :  { %s2751_s26 = smov 0   ;;  %s2753_s27 = smov 0  }
   0x6 LB: > { %s2768_s28 = sadd.s32 4294967295, %s2684_s27   ;;  %s1892_s29 = sadd.s32 4294967294, %s2684_s27   ;;  %s2684_s27 = sphi %s2753_s27, %s3298_s27   ;;  %s2680_s26 = sphi %s2751_s26, %s3297_s26   ;;  %s2676_s25 = sphi %s2749_s25, %s3296_s25   ;;  %s2672_s24 = sphi %s2747_s24, %s3295_s24  }
   0x7   : > { %p44_p0 = scmp.ne.s32.totalorder %s2676_s25, %s2672_s24  ;;  %p3275_p1 = scmp.eq.s32.totalorder %s2768_s28, 0 }
   0x8   : > { %p200_p3 = scmp.eq.s32.totalorder %s1892_s29, 1  ;;  %p1893_p5 = scmp.ge.s32.totalorder %s2684_s27, 1 }
   0x9   : > { %p2777_p4 = por %p3275_p1, %p44_p0  ;;  %p207_p7 = scmp.lt.s32.totalorder %s2684_s27, 3 }
   0xa   : > { %p2782_p6 = por %p200_p3, %p44_p0  ;;  %s2686_s10 = smov [#allocation6]  }
   0xb   : > { %s3279_s30 = scalar_select %p2777_p4, 1, 0 }
   0xc   : > { %s3280_s8 = scalar_select %p2782_p6, 1, 0 }
   0xd   : > { %p2787_p8 = pnand %p1893_p5, %p207_p7  ;;  %s225_s11 = sshll.u32 %s2686_s10, 4  ;;  %s2791_s11 = int_to_ptr.vmem [resolvable:$true] %s225_s11 }
   0xe   : > { %s2687_s13 = smov [#allocation8]   ;;  %s2528_s17 = scalar_lea.hbm %s3270_s3, 512 }
   0xf   : > { %p2300_p9 = pneg %p2787_p8  ;;  %s241_s14 = sshll.u32 %s2687_s13, 4  ;;  %s2802_s14 = int_to_ptr.vmem [resolvable:$true] %s241_s14 }
  0x10   : > { %p2529_p12 = scmp.ne.s32.totalorder %s3270_s3, %s2528_s17  ;;  %p2535_p5 = scmp.lt.u32.totalorder %s2528_s17, %s3270_s3 }
  0x11   : > { %p2798_p11 = pnand %p2300_p9, %p3275_p1 }
  0x13   : > { %p2530_p13 = pneg %p2798_p11 }
  0x15   : > { %p2531_p0 = pnand %p2530_p13, %p2529_p12 }
  0x17   : > { %p2532_p3 = pneg %p2531_p0 }
  0x19   : > { %p2537_p7 = pnand %p2535_p5, %p2532_p3 }
  0x1b   : > { %2540 = shalt.err (!%p2537_p7)
}
  0x1c   : > { %s2541_s22 = scalar_lea.vmem %s2791_s11, 512  ;;  %p2549_p2 = scmp.lt.s32.totalorder %s2791_s11, %s2791_s11 }
  0x1d   : > { %p2542_p9 = scmp.ne.s32.totalorder %s2791_s11, %s2541_s22  ;;  %p2550_p12 = scmp.lt.s32.totalorder %s2541_s22, %s2541_s22 }
  0x1f   : > { %p2544_p10 = pnand %p2542_p9, %p2530_p13  ;;  %p2551_p0 = por %p2550_p12, %p2549_p2 }
  0x21   : > { %p2545_p1 = pneg %p2544_p10 }
  0x23   : > { %p2552_p6 = pnand %p2551_p0, %p2545_p1 }
  0x25   : > { %2555 = shalt.err (!%p2552_p6)
}
  0x26   : > { %s3276_s23 = smov 128   ;;  %s2689_s29 = smov 8  }
  0x27   : > { %2303 = dma.hbm_to_vmem [thread:$0]  (!%p2798_p11), %s3270_s3, 512, %s2791_s11, [#allocation7], %s3276_s23, %s3276_s23, %s2689_s29  }
  0x28   : > { %s2556_s17 = scalar_lea.hbm %s3272_s5, 512 }
  0x29   : > { %p2557_p1 = scmp.ne.s32.totalorder %s3272_s5, %s2556_s17  ;;  %p2563_p10 = scmp.lt.u32.totalorder %s2556_s17, %s3272_s5 }
  0x2b   : > { %p2559_p2 = pnand %p2557_p1, %p2530_p13 }
  0x2d   : > { %p2560_p6 = pneg %p2559_p2 }
  0x2f   : > { %p2565_p3 = pnand %p2563_p10, %p2560_p6 }
  0x31   : > { %2568 = shalt.err (!%p2565_p3)
}
  0x32   : > { %s2569_s11 = scalar_lea.vmem %s2802_s14, 512  ;;  %p2577_p12 = scmp.lt.s32.totalorder %s2802_s14, %s2802_s14 }
  0x33   : > { %p2570_p5 = scmp.ne.s32.totalorder %s2802_s14, %s2569_s11  ;;  %p2578_p0 = scmp.lt.s32.totalorder %s2569_s11, %s2569_s11 }
  0x35   : > { %p2572_p7 = pnand %p2570_p5, %p2530_p13  ;;  %p2579_p1 = por %p2578_p0, %p2577_p12 }
  0x37   : > { %p2573_p9 = pneg %p2572_p7 }
  0x39   : > { %p2580_p2 = pnand %p2579_p1, %p2573_p9 }
  0x3b   : > { %2583 = shalt.err (!%p2580_p2)
}
  0x3c   : > { %2306 = dma.hbm_to_vmem [thread:$0]  (!%p2798_p11), %s3272_s5, 512, %s2802_s14, [#allocation7], %s3276_s23, %s3276_s23, %s2689_s29  }
  0x3d   : > { %s2863_s12 = sadd.s32 1, %s2684_s27   ;;  %s31_s13 = sadd.s32 1, %s2680_s26 }
  0x3e   : > { %s28_s15 = ssub.s32 %s2684_s27, %s2863_s12  ;;  %p38_p13 = scmp.ne.s32.totalorder %s2680_s26, %s2676_s25 }
  0x3f   : > { %p29_p6 = scmp.eq.s32.totalorder %s28_s15, 0  ;;  %p39_p10 = scmp.eq.s32.totalorder %s2684_s27, 0 }
  0x40   : > { %p3283_p3 = scmp.eq.s32.totalorder %s2768_s28, 1  ;;  %p2317_p7 = scmp.lt.s32.totalorder %s2684_s27, 2 }
  0x41   : > { %s2879_s17 = scalar_select %p29_p6, %s2680_s26, %s31_s13  }
  0x42   : > { %p2873_p5 = por %p3283_p3, %p38_p13  ;;  %p40_p9 = por %p39_p10, %p38_p13 }
  0x43   : > { %s258_s18 = sand.u32 1, %s2680_s26   ;;  %s1970_s14 = sshll.u32 %s2684_s27, 9 }
  0x44   : > { %s3284_s16 = scalar_select %p2873_p5, 1, 0 }
  0x45   : > { %s1897_s19 = sshll.u32 %s258_s18, 5  ;;  %s2886_s11 = scalar_lea.hbm %s3267_s0, %s1970_s14 }
  0x46   : > { %s262_s22 = scalar_lea.vmem [#allocation3], %s1897_s19  ;;  %p2890_p11 = pnand %p2317_p7, %p40_p9 }
  0x47   : > { %s269_s10 = sshll.u32 %s262_s22, 4  ;;  %s2894_s15 = scalar_lea.sflag [#allocation4], %s258_s18  ;;  %s2888_s10 = int_to_ptr.vmem [resolvable:$true] %s269_s10 }
  0x48   : > { %s2584_s23 = scalar_lea.hbm %s2886_s11, 512  ;;  %p2586_p0 = pneg %p2890_p11 }
  0x49   : > { %p2585_p12 = scmp.ne.s32.totalorder %s2886_s11, %s2584_s23  ;;  %s2589_s20 = scalar_lea.hbm %s3267_s0, 1024 }
  0x4a   : > { %p2590_p13 = scmp.lt.u32.totalorder %s2886_s11, %s3267_s0  ;;  %p2591_p6 = scmp.lt.u32.totalorder %s2589_s20, %s2584_s23 }
  0x4b   : > { %p2587_p1 = pnand %p2586_p0, %p2585_p12  ;;  %p2593_p3 = scmp.lt.u32.totalorder %s2584_s23, %s2886_s11 }
  0x4c   : > { %p2592_p10 = por %p2591_p6, %p2590_p13 }
  0x4d   : > { %p2588_p2 = pneg %p2587_p1 }
  0x4e   : > { %p2594_p7 = por %p2593_p3, %p2592_p10 }
  0x50   : > { %p2595_p9 = pnand %p2594_p7, %p2588_p2 }
  0x52   : > { %2598 = shalt.err (!%p2595_p9)
}
  0x53   : > { %s2599_s18 = scalar_lea.vmem %s2888_s10, 512  ;;  %s2690_s19 = smov [#allocation3]  }
  0x54   : > { %p2600_p12 = scmp.ne.s32.totalorder %s2888_s10, %s2599_s18  ;;  %s2604_s14 = sshll.u32 %s2690_s19, 4  ;;  %s2605_s14 = int_to_ptr.vmem [resolvable:$false] %s2604_s14 }
  0x55   : > { %s2606_s21 = scalar_lea.vmem %s2605_s14, 1024  ;;  %p2607_p4 = scmp.lt.s32.totalorder %s2888_s10, %s2605_s14 }
  0x56   : > { %p2602_p1 = pnand %p2600_p12, %p2586_p0  ;;  %p2608_p13 = scmp.lt.s32.totalorder %s2606_s21, %s2599_s18 }
  0x58   : > { %p2603_p5 = pneg %p2602_p1  ;;  %p2609_p6 = por %p2608_p13, %p2607_p4 }
  0x5a   : > { %p2610_p10 = pnand %p2609_p6, %p2603_p5 }
  0x5c   : > { %2613 = shalt.err (!%p2610_p10)
}
  0x5d   : > { %s3286_s23 = smov 128   ;;  %281 = sbr.rel (%p2787_p8) target bundleno = 2929 (0xb71), region = 48 }
  0x5e   : > { %2310 = dma.hbm_to_vmem [thread:$0]  (!%p2890_p11), %s2886_s11, 512, %s2888_s10, %s2894_s15, %s3286_s23, %s3286_s23, %s2689_s29  }
  0x5f   : > { %s2928_s20 = sand.u32 (!%p2787_p8), 1, %s2676_s25   ;;  %p3287_p4 = scmp.ne.s32.totalorder (!%p2787_p8), %s3279_s30, 0 }
  0x60   : > { %s1901_s22 = sshll.u32 (!%p2787_p8), %s2928_s20, 5  ;;  %s284_s18 = scalar_lea.sflag (!%p2787_p8), [#allocation4], %s2928_s20 }
  0x61   : > { %s2934_s13 = scalar_lea.vmem (!%p2787_p8), [#allocation3], %s1901_s22 }
  0x64   : > { %2659 = dma.done.wait (%p3287_p4), %s284_s18, 512  }
  0x65   : > { %2661 = vsyncadd (%p3287_p4), %s284_s18, 4294966784  ;;  %p3288_p5 = scmp.eq.s32.totalorder %s2768_s28, 0 }
  0x67   : > { %2663 = dma.done.wait (%p3288_p5), [#allocation7], 1024   ;;  %p3289_p8 = pmov %p3288_p5 }
  0x68   : > { %vm330_vm0 = vcmask 261120   ;;  %v326_v0 = vld [vmem:[%s2934_s13] sm:$0xff]  ;;  %v328_v1 = vld [vmem:[%s2934_s13 + $0x10] sm:$0xff]  ;;  %v327_v2 = vld [vmem:[%s2934_s13 + $0x8] sm:$0xff]  ;;  %vm530_vm1 = vcmask 64512   ;;  %s2691_s19 = smov 96  }
  0x69   : > { %2665 = vsyncadd (%p3289_p8), [#allocation7], 4294966272  ;;  %v331_v3 = vsel %vm330_vm0, %v326_v0, 0.0  ;;  %v337_v4 = vsel %vm330_vm0, %v328_v1, 0.0  ;;  %v329_v5 = vld [vmem:[%s2934_s13 + $0x18] sm:$0xff]  ;;  %v334_v6 = vsel %vm330_vm0, %v327_v2, 0.0 }
  0x6a   : > { %332 = vadd.xlane.f32.xlu0 %v331_v3  ;;  %338 = vadd.xlane.f32.xlu1 %v337_v4  ;;  %v340_v7 = vsel %vm330_vm0, %v329_v5, 0.0  ;;  %v406_v28 = vld [vmem:[#allocation6] sm:$0xff]  ;;  %v407_v29 = vld [vmem:[#allocation6 + $0x8] sm:$0xff]  ;;  %v408_v30 = vld [vmem:[#allocation6 + $0x10] sm:$0xff]  ;;  %s2692_s14 = smov 64   ;;  %s2693_s21 = smov 88  }
  0x6b   : > { %v2192_v31 = vpack.c.bf16 %v407_v29, %v406_v28  ;;  %v409_v32 = vld [vmem:[#allocation6 + $0x18] sm:$0xff]  ;;  %v1905_v47 = vld [vmem:[%s3268_s1] ss:$0 sm:$0xff]  ;;  %vm2981_vm2 = vmpackc.low %vm530_vm1, %vm530_vm1  ;;  %s2694_s23 = smov 120   ;;  %s2695_s18 = smov 56   ;;  %vm1079_vm3 = vcmask 130112  }
  0x6c   : > { %v2196_v33 = vpack.c.bf16 %v409_v32, %v408_v30  ;;  %v1906_v49 = vld [vmem:[%s3269_s2] ss:$0 sm:$0xff]  ;;  %s2696_s30 = smov 80   ;;  %s2697_s9 = smov 112   ;;  %vm1370_vm4 = vcmask 195712   ;;  %vm1661_vm5 = vcmask 261312  }
  0x6d   : > { %2193 = vmatprep.subr.bf16.mxu0 %v2192_v31  ;;  %s2698_s29 = smov 48   ;;  %s2699_s11 = smov 72  }
  0x6e   : > { %335 = vadd.xlane.f32.xlu0 %v334_v6  ;;  %341 = vadd.xlane.f32.xlu1 %v340_v7  ;;  %s2700_s10 = smov 104   ;;  %s2701_s15 = smov 40  }
  0x6f   : > { %2195 = vmatpush3.bf16.msra.mxu0 %v2192_v31  ;;  %p3292_p0 = scmp.ne.s32.totalorder %s3284_s16, 0 }
  0x70   : > { %2197 = vmatprep.subr.bf16.mxu0 %v2196_v33 }
  0x73   : > { %2199 = vmatpush3.bf16.msra.mxu0 %v2196_v33 }
  0xf7   : > { %v333_v8 = vpop.xlane.xlu0 %332  ;;  %v339_v9 = vpop.xlane.xlu1 %338 }
  0xf8   : > { %v344_v10 = vmul.f32 0.03125, %v333_v8  ;;  %v346_v11 = vmul.f32 0.03125, %v339_v9 }
  0xfa   : > { %v348_v12 = vsub.f32 %v326_v0, %v344_v10  ;;  %v350_v13 = vsub.f32 %v328_v1, %v346_v11  ;;  %v1907_v0 = vld [vmem:[%s3271_s4] ss:$0 sm:$0xff] }
  0xfb   : > { %v336_v14 = vpop.xlane.xlu0 %335  ;;  %v342_v15 = vpop.xlane.xlu1 %341 }
  0xfc   : > { %v345_v16 = vmul.f32 0.03125, %v336_v14  ;;  %v347_v17 = vmul.f32 0.03125, %v342_v15  ;;  %v352_v18 = vmul.f32 %v348_v12, %v348_v12  ;;  %v354_v19 = vmul.f32 %v350_v13, %v350_v13 }
  0xfe   : > { %v349_v20 = vsub.f32 %v327_v2, %v345_v16  ;;  %v351_v21 = vsub.f32 %v329_v5, %v347_v17  ;;  %v356_v22 = vsel %vm330_vm0, %v352_v18, 0.0  ;;  %v362_v23 = vsel %vm330_vm0, %v354_v19, 0.0 }
  0xff   : > { %357 = vadd.xlane.f32.xlu0 %v356_v22 }
 0x100   : > { %v353_v24 = vmul.f32 %v349_v20, %v349_v20  ;;  %v355_v25 = vmul.f32 %v351_v21, %v351_v21 }
 0x102   : > { %v359_v26 = vsel %vm330_vm0, %v353_v24, 0.0  ;;  %v365_v27 = vsel %vm330_vm0, %v355_v25, 0.0 }
 0x103   : > { %363 = vadd.xlane.f32.xlu0 %v362_v23  ;;  %360 = vadd.xlane.f32.xlu1 %v359_v26 }
 0x107   : > { %366 = vadd.xlane.f32.xlu1 %v365_v27 }
 0x18c   : > { %v358_v34 = vpop.xlane.xlu0 %357 }
 0x18d   : > { %v368_v35 = vmul.f32 0.03125, %v358_v34 }
 0x18f   : > { %v372_v36 = vadd.f32 1e-05, %v368_v35 }
 0x190   : > { %v361_v37 = vpop.xlane.xlu1 %360  ;;  %v364_v38 = vpop.xlane.xlu0 %363 }
 0x191   : > { %2452 = vrsqrt.f32 %v372_v36  ;;  %v369_v39 = vmul.f32 0.03125, %v361_v37  ;;  %v370_v40 = vmul.f32 0.03125, %v364_v38 }
 0x193   : > { %v373_v41 = vadd.f32 1e-05, %v369_v39  ;;  %v374_v42 = vadd.f32 1e-05, %v370_v40 }
 0x194   : > { %v367_v43 = vpop.xlane.xlu1 %366 }
 0x195   : > { %2454 = vrsqrt.f32 %v373_v41  ;;  %v371_v44 = vmul.f32 0.03125, %v367_v43 }
 0x196   : > { %2456 = vrsqrt.f32 %v374_v42 }
 0x197   : > { %v375_v45 = vadd.f32 1e-05, %v371_v44 }
 0x199   : > { %2458 = vrsqrt.f32 %v375_v45 }
 0x19b   : > { %v2453_v46 = vpop.eup %2452 }
 0x19c   : > { %v380_v48 = vmul.f32 %v2453_v46, %v348_v12 }
 0x19e   : > { %v391_v50 = vmul.f32 %v1905_v47, %v380_v48 }
 0x19f   : > { %v2455_v51 = vpop.eup %2454 }
 0x1a0   : > { %v2457_v52 = vpop.eup %2456  ;;  %v402_v53 = vadd.f32 %v1906_v49, %v391_v50  ;;  %v381_v54 = vmul.f32 %v2455_v51, %v349_v20 }
 0x1a1   : > { %v382_v55 = vmul.f32 %v2457_v52, %v350_v13 }
 0x1a2   : > { %2060 = vmatprep.mubr.msk.f32.mxu0 %vm330_vm0, %v402_v53  ;;  %v392_v56 = vmul.f32 %v1905_v47, %v381_v54 }
 0x1a3   : > { %v2459_v57 = vpop.eup %2458  ;;  %v393_v58 = vmul.f32 %v1905_v47, %v382_v55 }
 0x1a4   : > { %v403_v59 = vadd.f32 %v1906_v49, %v392_v56  ;;  %v383_v60 = vmul.f32 %v2459_v57, %v351_v21 }
 0x1a5   : > { %v404_v61 = vadd.f32 %v1906_v49, %v393_v58 }
 0x1a6   : > { %2061 = vmatmul.mubr.msk.f32.vlgmr.msra.gmra.mrb[0].mxu0 %vm330_vm0, %v403_v59  ;;  %v394_v62 = vmul.f32 %v1905_v47, %v383_v60 }
 0x1a7   : > { %2063 = vmatprep.mubr.msk.f32.mxu0 %vm330_vm0, %v404_v61 }
 0x1a8   : > { %v405_v63 = vadd.f32 %v1906_v49, %v394_v62 }
 0x1aa   : > { %2064 = vmatmul.mubr.msk.f32.gmra.mrb[2].mxu0 %vm330_vm0, %v405_v63 }
 0x279   : > { %v2062_v1 = vpop.f32.mrb[0].mxu0 }
 0x27a   : > { %v501_v2 = vadd.f32 %v2062_v1, %v1907_v0  ;;  %v495_v3 = vpop.f32.mrb[1].mxu0 }
 0x27b   : > { %v496_v4 = vadd.f32 %v1907_v0, %v495_v3 }
 0x27c   : > { %v2993_v21 = vmul.f32 0.35355338, %v501_v2 }
 0x27d   : > { %v2065_v5 = vpop.f32.mrb[2].mxu0  ;;  %v2969_v6 = vpack.i.bf16 %v501_v2, %v496_v4  ;;  %v2971_v7 = vmul.f32 0.35355338, %v496_v4 }
 0x27e   : > { %v511_v8 = vadd.f32 %v2065_v5, %v1907_v0  ;;  %v505_v9 = vpop.f32.mrb[3].mxu0 }
 0x27f   : > { %v506_v10 = vadd.f32 %v1907_v0, %v505_v9  ;;  %2373 = vrot.lane.b32.xlu0 %v2969_v6, %s2691_s19  ;;  %2074 = vmatprep.mubr.msk.f32.mxu1 %vm530_vm1, %v2971_v7 }
 0x280   : > { %v3001_v23 = vmul.f32 0.35355338, %v511_v8 }
 0x281   : > { %v2976_v11 = vpack.i.bf16 %v511_v8, %v506_v10  ;;  %v2995_v22 = vmul.f32 0.35355338, %v506_v10 }
 0x283   : > { %2378 = vrot.lane.b32.xlu1 %v2976_v11, %s2691_s19  ;;  %s2702_s19 = smov 8  }
 0x2f1   : > { %v2374_v12 = vpop.permute.xlu0 %2373 }
 0x2f2   : > { %v2376_v13 = vunpack.i.h.bf16 %v2374_v12  ;;  %v2375_v14 = vunpack.i.l.bf16 %v2374_v12 }
 0x2f4   : > { %v2200_v16 = vpack.c.bf16 %v2376_v13, %v2375_v14 }
 0x2f5   : > { %v2379_v17 = vpop.permute.xlu1 %2378 }
 0x2f6   : > { %v2381_v18 = vunpack.i.h.bf16 %v2379_v17  ;;  %v2380_v19 = vunpack.i.l.bf16 %v2379_v17  ;;  %2202 = vmatprep.subr.msk.bf16.mxu1 %vm2981_vm2, %v2200_v16 }
 0x2f7   : > { %2205 = vmatpush3.bf16.xpose.msk.msra.mxu1 %vm2981_vm2, %v2200_v16 }
 0x2f8   : > { %v2206_v20 = vpack.c.bf16 %v2381_v18, %v2380_v19 }
 0x2fa   : > { %2208 = vmatprep.subr.msk.bf16.mxu1 %vm2981_vm2, %v2206_v20 }
 0x2ff   : > { %2211 = vmatpush3.bf16.xpose.msk.msra.mxu1 %vm2981_vm2, %v2206_v20 }
 0x306   : > { %2075 = vmatmul.mubr.msk.f32.vlgmr.msra.gmra.mrb[0].mxu1 %vm530_vm1, %v2993_v21 }
 0x307   : > { %2077 = vmatprep.mubr.msk.f32.mxu1 %vm530_vm1, %v2995_v22 }
 0x30a   : > { %2078 = vmatmul.mubr.msk.f32.gmra.mrb[2].mxu1 %vm530_vm1, %v3001_v23 }
 0x3d9   : > { %v2076_v24 = vpop.f32.mrb[0].mxu1 }
 0x3da   : > { %v617_v25 = vpop.f32.mrb[1].mxu1  ;;  %v639_v26 = vsel %vm330_vm0, %v2076_v24, -inf }
 0x3db   : > { %640 = vmax.xlane.f32.xlu0 %v639_v26  ;;  %v636_v27 = vsel %vm330_vm0, %v617_v25, -inf }
 0x3dc   : > { %637 = vmax.xlane.f32.xlu1 %v636_v27 }
 0x3dd   : > { %v2079_v28 = vpop.f32.mrb[2].mxu1 }
 0x3de   : > { %v627_v29 = vpop.f32.mrb[3].mxu1  ;;  %v645_v30 = vsel %vm330_vm0, %v2079_v28, -inf }
 0x3df   : > { %v642_v31 = vsel %vm330_vm0, %v627_v29, -inf }
 0x3e0   : > { %646 = vmax.xlane.f32.xlu1 %v645_v30  ;;  %643 = vmax.xlane.f32.xlu0 %v642_v31 }
 0x3f1   : > { %2388 = vrot.lane.b32.xlu1 %v2976_v11, %s2692_s14 }
 0x3f5   : > { %2393 = vrot.lane.b32.xlu1 %v2969_v6, %s2693_s21 }
 0x3f6   : > { %2383 = vrot.lane.b32.xlu0 %v2969_v6, %s2692_s14  ;;  %s2703_s14 = smov 16  }
 0x3f9   : > { %2398 = vrot.lane.b32.xlu1 %v2976_v11, %s2693_s21  ;;  %s2704_s21 = smov 24  }
 0x3fa   : > { %793 = vrot.lane.b32.xlu0 %v2971_v7, %s2694_s23 }
 0x3fd   : > { %795 = vrot.lane.b32.xlu1 %v2993_v21, %s2694_s23 }
 0x3fe   : > { %797 = vrot.lane.b32.xlu0 %v2995_v22, %s2694_s23 }
 0x401   : > { %799 = vrot.lane.b32.xlu1 %v3001_v23, %s2694_s23 }
 0x468   : > { %v641_v32 = vpop.xlane.xlu0 %640 }
 0x469   : > { %v638_v33 = vpop.xlane.xlu1 %637  ;;  %v649_v35 = vsub.f32 %v2076_v24, %v641_v32 }
 0x46a   : > { %v648_v34 = vsub.f32 %v617_v25, %v638_v33 }
 0x46b   : > { %v654_v40 = vmul.f32 1.442695, %v649_v35 }
 0x46c   : > { %v652_v36 = vmul.f32 1.442695, %v648_v34 }
 0x46d   : > { %v647_v37 = vpop.xlane.xlu1 %646  ;;  %v644_v38 = vpop.xlane.xlu0 %643 }
 0x46e   : > { %2460 = vpow2.f32 %v652_v36  ;;  %v650_v39 = vsub.f32 %v627_v29, %v644_v38  ;;  %v651_v41 = vsub.f32 %v2079_v28, %v647_v37 }
 0x46f   : > { %2462 = vpow2.f32 %v654_v40 }
 0x470   : > { %v656_v42 = vmul.f32 1.442695, %v650_v39  ;;  %v658_v49 = vmul.f32 1.442695, %v651_v41 }
 0x471   : > { %v2389_v43 = vpop.permute.xlu1 %2388  ;;  %v2384_v44 = vpop.permute.xlu0 %2383 }
 0x472   : > { %v2386_v45 = vunpack.i.h.bf16 %v2384_v44  ;;  %v2391_v46 = vunpack.i.h.bf16 %v2389_v43  ;;  %v2390_v47 = vunpack.i.l.bf16 %v2389_v43  ;;  %v2385_v48 = vunpack.i.l.bf16 %v2384_v44 }
 0x473   : > { %2464 = vpow2.f32 %v656_v42 }
 0x474   : > { %v2212_v50 = vpack.c.bf16 %v2386_v45, %v2385_v48  ;;  %v2216_v52 = vpack.c.bf16 %v2391_v46, %v2390_v47  ;;  %2466 = vpow2.f32 %v658_v49 }
 0x475   : > { %v2394_v51 = vpop.permute.xlu1 %2393  ;;  %v794_v63 = vpop.permute.xlu0 %793 }
 0x476   : > { %v2396_v53 = vunpack.i.h.bf16 %v2394_v51  ;;  %v2395_v54 = vunpack.i.l.bf16 %v2394_v51  ;;  %2213 = vmatprep.subr.bf16.mxu0 %v2212_v50 }
 0x477   : > { %2215 = vmatpush3.bf16.msra.mxu0 %v2212_v50 }
 0x478   : > { %v3017_v55 = vpop.eup %2460  ;;  %2217 = vmatprep.subr.bf16.mxu0 %v2216_v52  ;;  %v2220_v56 = vpack.c.bf16 %v2396_v53, %v2395_v54 }
 0x479   : > { %2088 = vmatprep.mubr.msk.f32.mxu0 %vm330_vm0, %v3017_v55  ;;  %v2399_v57 = vpop.permute.xlu1 %2398  ;;  %v3023_v58 = vpop.eup %2462 }
 0x47a   : > { %v2401_v60 = vunpack.i.h.bf16 %v2399_v57  ;;  %v2400_v61 = vunpack.i.l.bf16 %v2399_v57  ;;  %v798_v2 = vpop.permute.xlu0 %797 }
 0x47b   : > { %2219 = vmatpush3.bf16.msra.mxu0 %v2216_v52 }
 0x47c   : > { %2222 = vmatprep.subr.msk.bf16.mxu0 %vm2981_vm2, %v2220_v56  ;;  %v2226_v0 = vpack.c.bf16 %v2401_v60, %v2400_v61 }
 0x47d   : > { %v3025_v59 = vpop.eup %2464  ;;  %v796_v1 = vpop.permute.xlu1 %795 }
 0x47e   : > { %2089 = vmatmul.mubr.msk.f32.vlgmr.msra.gmra.mrb[4].mxu0 %vm330_vm0, %v3023_v58  ;;  %v3031_v62 = vpop.eup %2466 }
 0x47f   : > { %2091 = vmatprep.mubr.msk.f32.mxu0 %vm330_vm0, %v3025_v59 }
 0x481   : > { %v800_v3 = vpop.permute.xlu1 %799 }
 0x482   : > { %2092 = vmatmul.mubr.msk.f32.gmra.mrb[6].mxu0 %vm330_vm0, %v3031_v62 }
 0x483   : > { %2102 = vmatprep.mubr.msk.f32.mxu0 %vm530_vm1, %v794_v63 }
 0x484   : > { %2225 = vmatpush3.bf16.xpose.msk.msra.mxu0 %vm2981_vm2, %v2220_v56 }
 0x485   : > { %2228 = vmatprep.subr.msk.bf16.mxu0 %vm2981_vm2, %v2226_v0 }
 0x48c   : > { %2231 = vmatpush3.bf16.xpose.msk.msra.mxu0 %vm2981_vm2, %v2226_v0 }
 0x493   : > { %2103 = vmatmul.mubr.msk.f32.vlgmr.msra.gmra.mrb[8].mxu0 %vm530_vm1, %v796_v1 }
 0x494   : > { %2105 = vmatprep.mubr.msk.f32.mxu0 %vm530_vm1, %v798_v2 }
 0x497   : > { %2106 = vmatmul.mubr.msk.f32.gmra.mrb[10].mxu0 %vm530_vm1, %v800_v3 }
 0x551   : > { %v3045_v4 = vpop.f32.mrb[4].mxu0 }
 0x552   : > { %v3047_v5 = vpop.f32.mrb[5].mxu0 }
 0x555   : > { %v3049_v8 = vpop.f32.mrb[6].mxu0 }
 0x556   : > { %v3051_v9 = vpop.f32.mrb[7].mxu0 }
 0x566   : > { %v2104_v10 = vpop.f32.mrb[8].mxu0 }
 0x567   : > { %v891_v12 = vpop.f32.mrb[9].mxu0  ;;  %v913_v13 = vsel %vm330_vm0, %v2104_v10, -inf }
 0x568   : > { %914 = vmax.xlane.f32.xlu1 %v913_v13  ;;  %v910_v14 = vsel %vm330_vm0, %v891_v12, -inf }
 0x569   : > { %911 = vmax.xlane.f32.xlu0 %v910_v14 }
 0x56a   : > { %v2107_v16 = vpop.f32.mrb[10].mxu0 }
 0x56b   : > { %v901_v17 = vpop.f32.mrb[11].mxu0  ;;  %v919_v18 = vsel %vm330_vm0, %v2107_v16, -inf }
 0x56c   : > { %v916_v19 = vsel %vm330_vm0, %v901_v17, -inf }
 0x56d   : > { %920 = vmax.xlane.f32.xlu0 %v919_v18 }
 0x571   : > { %917 = vmax.xlane.f32.xlu0 %v916_v19 }
 0x579   : > { %2408 = vrot.lane.b32.xlu1 %v2976_v11, %s2695_s18 }
 0x57d   : > { %2413 = vrot.lane.b32.xlu1 %v2969_v6, %s2696_s30 }
 0x581   : > { %2418 = vrot.lane.b32.xlu1 %v2976_v11, %s2696_s30  ;;  %s325_s30 = scalar_lea.vmem [#allocation9], %s1901_s22 }
 0x585   : > { %1086 = vrot.lane.b32.xlu1 %v2993_v21, %s2697_s9 }
 0x587   : > { %2403 = vrot.lane.b32.xlu0 %v2969_v6, %s2695_s18 }
 0x589   : > { %1090 = vrot.lane.b32.xlu1 %v3001_v23, %s2697_s9 }
 0x58b   : > { %1084 = vrot.lane.b32.xlu0 %v2971_v7, %s2697_s9 }
 0x58f   : > { %1088 = vrot.lane.b32.xlu0 %v2995_v22, %s2697_s9  ;;  %s1800_s9 = sshll.u32 %s325_s30, 4  ;;  %s3213_s9 = int_to_ptr.vmem [resolvable:$true] %s1800_s9 }
 0x5f5   : > { %v915_v25 = vpop.xlane.xlu1 %914 }
 0x5f6   : > { %v912_v20 = vpop.xlane.xlu0 %911  ;;  %v923_v28 = vsub.f32 %v2104_v10, %v915_v25 }
 0x5f7   : > { %v922_v24 = vsub.f32 %v891_v12, %v912_v20 }
 0x5f8   : > { %v928_v32 = vmul.f32 1.442695, %v923_v28 }
 0x5f9   : > { %v926_v26 = vmul.f32 1.442695, %v922_v24  ;;  %v2409_v29 = vpop.permute.xlu1 %2408 }
 0x5fa   : > { %v921_v27 = vpop.xlane.xlu0 %920  ;;  %v2411_v36 = vunpack.i.h.bf16 %v2409_v29  ;;  %v2410_v37 = vunpack.i.l.bf16 %v2409_v29 }
 0x5fb   : > { %2468 = vpow2.f32 %v926_v26  ;;  %v925_v33 = vsub.f32 %v2107_v16, %v921_v27 }
 0x5fc   : > { %2470 = vpow2.f32 %v928_v32  ;;  %v2236_v44 = vpack.c.bf16 %v2411_v36, %v2410_v37 }
 0x5fd   : > { %v932_v40 = vmul.f32 1.442695, %v925_v33  ;;  %v2414_v41 = vpop.permute.xlu1 %2413 }
 0x5fe   : > { %v918_v30 = vpop.xlane.xlu0 %917  ;;  %v2416_v45 = vunpack.i.h.bf16 %v2414_v41  ;;  %v2415_v46 = vunpack.i.l.bf16 %v2414_v41 }
 0x5ff   : > { %v924_v31 = vsub.f32 %v901_v17, %v918_v30 }
 0x600   : > { %v2240_v47 = vpack.c.bf16 %v2416_v45, %v2415_v46 }
 0x601   : > { %v930_v34 = vmul.f32 1.442695, %v924_v31  ;;  %v2419_v48 = vpop.permute.xlu1 %2418 }
 0x602   : > { %v2404_v35 = vpop.permute.xlu0 %2403  ;;  %v2421_v51 = vunpack.i.h.bf16 %v2419_v48  ;;  %v2420_v52 = vunpack.i.l.bf16 %v2419_v48 }
 0x603   : > { %v2406_v38 = vunpack.i.h.bf16 %v2404_v35  ;;  %v2405_v39 = vunpack.i.l.bf16 %v2404_v35  ;;  %2472 = vpow2.f32 %v930_v34 }
 0x604   : > { %2474 = vpow2.f32 %v932_v40  ;;  %v2246_v56 = vpack.c.bf16 %v2421_v51, %v2420_v52 }
 0x605   : > { %v3065_v42 = vpop.eup %2468  ;;  %v2232_v43 = vpack.c.bf16 %v2406_v38, %v2405_v39  ;;  %v1087_v57 = vpop.permute.xlu1 %1086 }
 0x606   : > { %2116 = vmatprep.mubr.msk.f32.mxu1 %vm330_vm0, %v3065_v42  ;;  %v3071_v49 = vpop.eup %2470  ;;  %v1085_v54 = vpop.permute.xlu0 %1084 }
 0x607   : > { %2233 = vmatprep.subr.bf16.mxu1 %v2232_v43 }
 0x608   : > { %2235 = vmatpush3.bf16.msra.mxu1 %v2232_v43 }
 0x609   : > { %2237 = vmatprep.subr.bf16.mxu1 %v2236_v44  ;;  %v1091_v61 = vpop.permute.xlu1 %1090 }
 0x60a   : > { %v1089_v60 = vpop.permute.xlu0 %1088 }
 0x60c   : > { %2239 = vmatpush3.bf16.msra.mxu1 %v2236_v44 }
 0x60d   : > { %2242 = vmatprep.subr.msk.bf16.mxu1 %vm2981_vm2, %v2240_v47  ;;  %v3073_v50 = vpop.eup %2472 }
 0x60e   : > { %v3079_v53 = vpop.eup %2474 }
 0x60f   : > { %2117 = vmatmul.mubr.msk.f32.vlgmr.msra.gmra.mrb[4].mxu1 %vm330_vm0, %v3071_v49 }
 0x610   : > { %2119 = vmatprep.mubr.msk.f32.mxu1 %vm330_vm0, %v3073_v50 }
 0x613   : > { %2120 = vmatmul.mubr.msk.f32.gmra.mrb[6].mxu1 %vm330_vm0, %v3079_v53 }
 0x614   : > { %2130 = vmatprep.mubr.msk.f32.mxu1 %vm530_vm1, %v1085_v54 }
 0x615   : > { %2245 = vmatpush3.bf16.xpose.msk.msra.mxu1 %vm2981_vm2, %v2240_v47 }
 0x616   : > { %2248 = vmatprep.subr.msk.bf16.mxu1 %vm2981_vm2, %v2246_v56 }
 0x61d   : > { %2251 = vmatpush3.bf16.xpose.msk.msra.mxu1 %vm2981_vm2, %v2246_v56 }
 0x624   : > { %2131 = vmatmul.mubr.msk.f32.vlgmr.msra.gmra.mrb[8].mxu1 %vm530_vm1, %v1087_v57 }
 0x625   : > { %2133 = vmatprep.mubr.msk.f32.mxu1 %vm530_vm1, %v1089_v60 }
 0x628   : > { %2134 = vmatmul.mubr.msk.f32.gmra.mrb[10].mxu1 %vm530_vm1, %v1091_v61 }
 0x6e2   : > { %v3093_v63 = vpop.f32.mrb[4].mxu1 }
 0x6e3   : > { %v3095_v0 = vpop.f32.mrb[5].mxu1 }
 0x6e6   : > { %v3097_v1 = vpop.f32.mrb[6].mxu1 }
 0x6e7   : > { %v3099_v2 = vpop.f32.mrb[7].mxu1 }
 0x6f7   : > { %v2132_v3 = vpop.f32.mrb[8].mxu1 }
 0x6f8   : > { %v1182_v10 = vpop.f32.mrb[9].mxu1  ;;  %v1204_v12 = vsel %vm330_vm0, %v2132_v3, -inf }
 0x6f9   : > { %1205 = vmax.xlane.f32.xlu1 %v1204_v12  ;;  %v1201_v13 = vsel %vm330_vm0, %v1182_v10, -inf }
 0x6fa   : > { %1202 = vmax.xlane.f32.xlu0 %v1201_v13 }
 0x6fb   : > { %v2135_v14 = vpop.f32.mrb[10].mxu1 }
 0x6fc   : > { %v1192_v16 = vpop.f32.mrb[11].mxu1  ;;  %v1210_v17 = vsel %vm330_vm0, %v2135_v14, -inf }
 0x6fd   : > { %v1207_v18 = vsel %vm330_vm0, %v1192_v16, -inf }
 0x6fe   : > { %1211 = vmax.xlane.f32.xlu0 %v1210_v17 }
 0x702   : > { %1208 = vmax.xlane.f32.xlu0 %v1207_v18 }
 0x70a   : > { %2428 = vrot.lane.b32.xlu1 %v2976_v11, %s2698_s29 }
 0x70e   : > { %2433 = vrot.lane.b32.xlu1 %v2969_v6, %s2699_s11 }
 0x712   : > { %2438 = vrot.lane.b32.xlu1 %v2976_v11, %s2699_s11 }
 0x716   : > { %1377 = vrot.lane.b32.xlu1 %v2993_v21, %s2700_s10 }
 0x718   : > { %2423 = vrot.lane.b32.xlu0 %v2969_v6, %s2698_s29  ;;  %s1971_s29 = sshll.u32 %s2768_s28, 9  ;;  %s1787_s28 = scalar_lea.sflag [#allocation5], %s2928_s20 }
 0x71a   : > { %1381 = vrot.lane.b32.xlu1 %v3001_v23, %s2700_s10 }
 0x71c   : > { %1375 = vrot.lane.b32.xlu0 %v2971_v7, %s2700_s10 }
 0x720   : > { %1379 = vrot.lane.b32.xlu0 %v2995_v22, %s2700_s10  ;;  %s3220_s10 = scalar_lea.hbm %s3274_s7, %s1971_s29 }
 0x786   : > { %v1206_v24 = vpop.xlane.xlu1 %1205 }
 0x787   : > { %v1203_v19 = vpop.xlane.xlu0 %1202  ;;  %v1214_v27 = vsub.f32 %v2132_v3, %v1206_v24  ;;  %v934_v24 = vsel %vm330_vm0, %v3065_v42, 0.0 }
 0x788   : > { %v1213_v20 = vsub.f32 %v1182_v10, %v1203_v19 }
 0x789   : > { %v1219_v31 = vmul.f32 1.442695, %v1214_v27  ;;  %v937_v27 = vsel %vm330_vm0, %v3071_v49, 0.0 }
 0x78a   : > { %v1217_v25 = vmul.f32 1.442695, %v1213_v20  ;;  %v2429_v28 = vpop.permute.xlu1 %2428 }
 0x78b   : > { %v1212_v26 = vpop.xlane.xlu0 %1211  ;;  %v2431_v34 = vunpack.i.h.bf16 %v2429_v28  ;;  %v2430_v23 = vunpack.i.l.bf16 %v2429_v28 }
 0x78c   : > { %2476 = vpow2.f32 %v1217_v25  ;;  %v1216_v21 = vsub.f32 %v2135_v14, %v1212_v26  ;;  %v943_v26 = vsel %vm330_vm0, %v3079_v53, 0.0 }
 0x78d   : > { %2478 = vpow2.f32 %v1219_v31  ;;  %v2256_v39 = vpack.c.bf16 %v2431_v34, %v2430_v23 }
 0x78e   : > { %v1223_v22 = vmul.f32 1.442695, %v1216_v21  ;;  %v2434_v36 = vpop.permute.xlu1 %2433 }
 0x78f   : > { %v1209_v29 = vpop.xlane.xlu0 %1208  ;;  %v2436_v40 = vunpack.i.h.bf16 %v2434_v36  ;;  %v2435_v41 = vunpack.i.l.bf16 %v2434_v36 }
 0x790   : > { %v1215_v30 = vsub.f32 %v1192_v16, %v1209_v29 }
 0x791   : > { %v2260_v43 = vpack.c.bf16 %v2436_v40, %v2435_v41 }
 0x792   : > { %v1221_v32 = vmul.f32 1.442695, %v1215_v30  ;;  %v2439_v44 = vpop.permute.xlu1 %2438 }
 0x793   : > { %v2424_v33 = vpop.permute.xlu0 %2423  ;;  %v2441_v47 = vunpack.i.h.bf16 %v2439_v44  ;;  %v2440_v48 = vunpack.i.l.bf16 %v2439_v44 }
 0x794   : > { %v2426_v35 = vunpack.i.h.bf16 %v2424_v33  ;;  %v2425_v7 = vunpack.i.l.bf16 %v2424_v33  ;;  %2480 = vpow2.f32 %v1221_v32 }
 0x795   : > { %2482 = vpow2.f32 %v1223_v22  ;;  %v2266_v54 = vpack.c.bf16 %v2441_v47, %v2440_v48 }
 0x796   : > { %v3113_v37 = vpop.eup %2476  ;;  %v2252_v38 = vpack.c.bf16 %v2426_v35, %v2425_v7  ;;  %v1378_v56 = vpop.permute.xlu1 %1377 }
 0x797   : > { %2144 = vmatprep.mubr.msk.f32.mxu0 %vm330_vm0, %v3113_v37  ;;  %v2479_v45 = vpop.eup %2478  ;;  %v1376_v52 = vpop.permute.xlu0 %1375 }
 0x798   : > { %2253 = vmatprep.subr.bf16.mxu0 %v2252_v38  ;;  %v1228_v25 = vsel %vm330_vm0, %v2479_v45, 0.0 }
 0x799   : > { %2255 = vmatpush3.bf16.msra.mxu0 %v2252_v38 }
 0x79a   : > { %2257 = vmatprep.subr.bf16.mxu0 %v2256_v39  ;;  %v1382_v60 = vpop.permute.xlu1 %1381 }
 0x79b   : > { %v1380_v57 = vpop.permute.xlu0 %1379 }
 0x79d   : > { %2259 = vmatpush3.bf16.msra.mxu0 %v2256_v39 }
 0x79e   : > { %2262 = vmatprep.subr.msk.bf16.mxu0 %vm2981_vm2, %v2260_v43  ;;  %v2481_v46 = vpop.eup %2480 }
 0x79f   : > { %v2483_v51 = vpop.eup %2482  ;;  %v1231_v42 = vsel %vm330_vm0, %v2481_v46, 0.0 }
 0x7a0   : > { %2145 = vmatmul.mubr.msk.f32.vlgmr.msra.gmra.mrb[12].mxu0 %vm330_vm0, %v2479_v45  ;;  %v1234_v28 = vsel %vm330_vm0, %v2483_v51, 0.0 }
 0x7a1   : > { %2147 = vmatprep.mubr.msk.f32.mxu0 %vm330_vm0, %v2481_v46 }
 0x7a4   : > { %2148 = vmatmul.mubr.msk.f32.gmra.mrb[14].mxu0 %vm330_vm0, %v2483_v51 }
 0x7a5   : > { %2158 = vmatprep.mubr.msk.f32.mxu0 %vm530_vm1, %v1376_v52  ;;  %v663_v52 = vsel %vm330_vm0, %v3023_v58, 0.0  ;;  %v666_v58 = vsel %vm330_vm0, %v3025_v59, 0.0 }
 0x7a6   : > { %2265 = vmatpush3.bf16.xpose.msk.msra.mxu0 %vm2981_vm2, %v2260_v43 }
 0x7a7   : > { %2268 = vmatprep.subr.msk.bf16.mxu0 %vm2981_vm2, %v2266_v54 }
 0x7ae   : > { %2271 = vmatpush3.bf16.xpose.msk.msra.mxu0 %vm2981_vm2, %v2266_v54 }
 0x7b5   : > { %2159 = vmatmul.mubr.msk.f32.vlgmr.msra.gmra.mrb[16].mxu0 %vm530_vm1, %v1378_v56  ;;  %v669_v56 = vsel %vm330_vm0, %v3031_v62, 0.0 }
 0x7b6   : > { %2161 = vmatprep.mubr.msk.f32.mxu0 %vm530_vm1, %v1380_v57  ;;  %v660_v57 = vsel %vm330_vm0, %v3017_v55, 0.0 }
 0x7b9   : > { %2162 = vmatmul.mubr.msk.f32.gmra.mrb[18].mxu0 %vm530_vm1, %v1382_v60 }
 0x873   : > { %v3132_v61 = vpop.f32.mrb[12].mxu0 }
 0x874   : > { %v3134_v3 = vpop.f32.mrb[13].mxu0 }
 0x877   : > { %v3136_v10 = vpop.f32.mrb[14].mxu0 }
 0x878   : > { %v3138_v12 = vpop.f32.mrb[15].mxu0 }
 0x888   : > { %v2160_v13 = vpop.f32.mrb[16].mxu0 }
 0x889   : > { %v1473_v15 = vpop.f32.mrb[17].mxu0  ;;  %v1495_v14 = vsel %vm330_vm0, %v2160_v13, -inf }
 0x88a   : > { %1496 = vmax.xlane.f32.xlu1 %v1495_v14  ;;  %v1492_v16 = vsel %vm330_vm0, %v1473_v15, -inf }
 0x88b   : > { %1493 = vmax.xlane.f32.xlu0 %v1492_v16 }
 0x88c   : > { %v2163_v17 = vpop.f32.mrb[18].mxu0 }
 0x88d   : > { %v1483_v18 = vpop.f32.mrb[19].mxu0  ;;  %v1501_v19 = vsel %vm330_vm0, %v2163_v17, -inf }
 0x88e   : > { %v1498_v20 = vsel %vm330_vm0, %v1483_v18, -inf }
 0x88f   : > { %1502 = vmax.xlane.f32.xlu0 %v1501_v19 }
 0x893   : > { %1499 = vmax.xlane.f32.xlu0 %v1498_v20 }
 0x89b   : > { %2448 = vrot.lane.b32.xlu1 %v2976_v11, %s2701_s15  ;;  %v940_v11 = vsel %vm330_vm0, %v3073_v50, 0.0 }
 0x8a9   : > { %2443 = vrot.lane.b32.xlu0 %v2969_v6, %s2701_s15  ;;  %v1225_v6 = vsel %vm330_vm0, %v3113_v37, 0.0  ;;  %s2614_s15 = scalar_lea.vmem %s3213_s9, 512 }
 0x8aa   : > { %p2615_p11 = scmp.ne.s32.totalorder %s3213_s9, %s2614_s15 }
 0x8ac   : > { %p2616_p2 = pnand %p2615_p11, %p3292_p0 }
 0x8ae   : > { %p2617_p3 = pneg %p2616_p2 }
 0x8bf   : > { %935 = vadd.xlane.f32.xlu1 %v934_v24 }
 0x8c3   : > { %1229 = vadd.xlane.f32.xlu1 %v1228_v25 }
 0x8c7   : > { %944 = vadd.xlane.f32.xlu1 %v943_v26 }
 0x8c8   : > { %938 = vadd.xlane.f32.xlu0 %v937_v27 }
 0x8cb   : > { %1235 = vadd.xlane.f32.xlu1 %v1234_v28 }
 0x8cc   : > { %1226 = vadd.xlane.f32.xlu0 %v1225_v6 }
 0x8d0   : > { %941 = vadd.xlane.f32.xlu0 %v940_v11 }
 0x8d4   : > { %1232 = vadd.xlane.f32.xlu0 %v1231_v42 }
 0x917   : > { %v1497_v53 = vpop.xlane.xlu1 %1496 }
 0x918   : > { %v1505_v29 = vsub.f32 %v2160_v13, %v1497_v53  ;;  %v1494_v30 = vpop.xlane.xlu0 %1493 }
 0x919   : > { %v1504_v31 = vsub.f32 %v1473_v15, %v1494_v30 }
 0x91a   : > { %v1510_v49 = vmul.f32 1.442695, %v1505_v29 }
 0x91b   : > { %v1508_v21 = vmul.f32 1.442695, %v1504_v31  ;;  %v2449_v35 = vpop.permute.xlu1 %2448 }
 0x91c   : > { %2484 = vpow2.f32 %v1510_v49  ;;  %v1503_v32 = vpop.xlane.xlu0 %1502  ;;  %v2451_v22 = vunpack.i.h.bf16 %v2449_v35  ;;  %v2450_v37 = vunpack.i.l.bf16 %v2449_v35 }
 0x91d   : > { %2486 = vpow2.f32 %v1508_v21  ;;  %v1507_v33 = vsub.f32 %v2163_v17, %v1503_v32 }
 0x91e   : > { %v2276_v46 = vpack.c.bf16 %v2451_v22, %v2450_v37 }
 0x91f   : > { %v1514_v34 = vmul.f32 1.442695, %v1507_v33 }
 0x920   : > { %v1500_v23 = vpop.xlane.xlu0 %1499 }
 0x921   : > { %2488 = vpow2.f32 %v1514_v34  ;;  %v1506_v7 = vsub.f32 %v1483_v18, %v1500_v23 }
 0x923   : > { %v1512_v50 = vmul.f32 1.442695, %v1506_v7 }
 0x924   : > { %v2444_v36 = vpop.permute.xlu0 %2443 }
 0x925   : > { %2490 = vpow2.f32 %v1512_v50  ;;  %v2446_v38 = vunpack.i.h.bf16 %v2444_v36  ;;  %v2445_v39 = vunpack.i.l.bf16 %v2444_v36 }
 0x926   : > { %v2485_v40 = vpop.eup %2484 }
 0x927   : > { %v2487_v41 = vpop.eup %2486  ;;  %v2272_v43 = vpack.c.bf16 %v2446_v38, %v2445_v39  ;;  %v1519_v44 = vsel %vm330_vm0, %v2485_v40, 0.0  ;;  %v1670_v38 = vld [vmem:[#allocation8] sm:$0xff]  ;;  %v1671_v39 = vld [vmem:[#allocation8 + $0x8] sm:$0xff] }
 0x928   : > { %1520 = vadd.xlane.f32.xlu1 %v1519_v44  ;;  %2172 = vmatprep.mubr.msk.f32.mxu1 %vm330_vm0, %v2487_v41  ;;  %v1516_v45 = vsel %vm330_vm0, %v2487_v41, 0.0  ;;  %v1672_v41 = vld [vmem:[#allocation8 + $0x10] sm:$0xff] }
 0x929   : > { %1517 = vadd.xlane.f32.xlu0 %v1516_v45  ;;  %2273 = vmatprep.subr.bf16.mxu1 %v2272_v43 }
 0x92a   : > { %2275 = vmatpush3.bf16.msra.mxu1 %v2272_v43  ;;  %v1673_v43 = vld [vmem:[#allocation8 + $0x18] sm:$0xff] }
 0x92b   : > { %v2489_v47 = vpop.eup %2488  ;;  %2277 = vmatprep.subr.bf16.mxu1 %v2276_v46  ;;  %v2284_v44 = vpack.c.bf16 %v1673_v43, %v1672_v41 }
 0x92c   : > { %v1525_v48 = vsel %vm330_vm0, %v2489_v47, 0.0 }
 0x92d   : > { %1526 = vadd.xlane.f32.xlu1 %v1525_v48 }
 0x92e   : > { %2279 = vmatpush3.bf16.msra.mxu1 %v2276_v46 }
 0x92f   : > { %v2491_v51 = vpop.eup %2490 }
 0x930   : > { %v1522_v54 = vsel %vm330_vm0, %v2491_v51, 0.0 }
 0x931   : > { %664 = vadd.xlane.f32.xlu1 %v663_v52  ;;  %1523 = vadd.xlane.f32.xlu0 %v1522_v54 }
 0x932   : > { %2173 = vmatmul.mubr.msk.f32.vlgmr.msra.gmra.mrb[12].mxu1 %vm330_vm0, %v2485_v40  ;;  %v2280_v40 = vpack.c.bf16 %v1671_v39, %v1670_v38 }
 0x933   : > { %2175 = vmatprep.mubr.msk.f32.mxu1 %vm330_vm0, %v2491_v51 }
 0x934   : > { %2281 = vmatprep.subr.bf16.mxu1 %v2280_v40 }
 0x935   : > { %670 = vadd.xlane.f32.xlu1 %v669_v56  ;;  %661 = vadd.xlane.f32.xlu0 %v660_v57 }
 0x936   : > { %2176 = vmatmul.mubr.msk.f32.gmra.mrb[14].mxu1 %vm330_vm0, %v2489_v47 }
 0x937   : > { %2283 = vmatpush3.bf16.msra.mxu1 %v2280_v40 }
 0x938   : > { %2285 = vmatprep.subr.bf16.mxu1 %v2284_v44 }
 0x939   : > { %667 = vadd.xlane.f32.xlu0 %v666_v58 }
 0x93b   : > { %2287 = vmatpush3.bf16.msra.mxu1 %v2284_v44 }
 0x94c   : > { %v936_v60 = vpop.xlane.xlu1 %935 }
 0x94d   : > { %2492 = vrcp.f32 %v936_v60 }
 0x950   : > { %v1230_v13 = vpop.xlane.xlu1 %1229 }
 0x954   : > { %v945_v55 = vpop.xlane.xlu1 %944 }
 0x955   : > { %v939_v15 = vpop.xlane.xlu0 %938 }
 0x956   : > { %2494 = vrcp.f32 %v939_v15 }
 0x957   : > { %v2493_v14 = vpop.eup %2492 }
 0x958   : > { %v1059_v16 = vmul.f32 %v2493_v14, %v3095_v0  ;;  %v1236_v59 = vpop.xlane.xlu1 %1235 }
 0x959   : > { %v1227_v62 = vpop.xlane.xlu0 %1226 }
 0x95a   : > { %2496 = vrcp.f32 %v1227_v62  ;;  %1067 = vrot.lane.b32.xlu0 %v1059_v16, %s2702_s19 }
 0x95b   : > { %2498 = vrcp.f32 %v1230_v13 }
 0x95d   : > { %v942_v17 = vpop.xlane.xlu0 %941 }
 0x95e   : > { %2500 = vrcp.f32 %v942_v17 }
 0x95f   : > { %2502 = vrcp.f32 %v945_v55 }
 0x960   : > { %v2495_v18 = vpop.eup %2494 }
 0x961   : > { %v1233_v19 = vpop.xlane.xlu0 %1232  ;;  %v1060_v20 = vmul.f32 %v2495_v18, %v3093_v63 }
 0x962   : > { %2504 = vrcp.f32 %v1233_v19  ;;  %v1960_v19 = vld [vmem:[%s3273_s6] ss:$0 sm:$0xff] }
 0x963   : > { %1069 = vrot.lane.b32.xlu1 %v1060_v20, %s2702_s19  ;;  %2506 = vrcp.f32 %v1236_v59 }
 0x964   : > { %v2497_v24 = vpop.eup %2496 }
 0x965   : > { %v1350_v0 = vmul.f32 %v2497_v24, %v3134_v3  ;;  %v2499_v25 = vpop.eup %2498 }
 0x966   : > { %v1351_v27 = vmul.f32 %v2499_v25, %v3132_v61 }
 0x967   : > { %1358 = vrot.lane.b32.xlu1 %v1350_v0, %s2703_s14 }
 0x968   : > { %v2501_v26 = vpop.eup %2500 }
 0x969   : > { %v1061_v28 = vmul.f32 %v2501_v26, %v3099_v2  ;;  %v2503_v6 = vpop.eup %2502  ;;  %v2524_v26 = vld [vmem:[%s2934_s13 + $0x8] sm:$0xff] }
 0x96a   : > { %v1062_v11 = vmul.f32 %v2503_v6, %v3097_v1 }
 0x96b   : > { %1360 = vrot.lane.b32.xlu1 %v1351_v27, %s2703_s14  ;;  %1071 = vrot.lane.b32.xlu0 %v1061_v28, %s2702_s19  ;;  %v2525_v28 = vld [vmem:[%s2934_s13] sm:$0xff] }
 0x96c   : > { %v2505_v63 = vpop.eup %2504 }
 0x96d   : > { %v1352_v42 = vmul.f32 %v2505_v63, %v3138_v12  ;;  %v2507_v53 = vpop.eup %2506 }
 0x96e   : > { %v1353_v3 = vmul.f32 %v2507_v53, %v3136_v10 }
 0x96f   : > { %1073 = vrot.lane.b32.xlu1 %v1062_v11, %s2702_s19  ;;  %1362 = vrot.lane.b32.xlu0 %v1352_v42, %s2703_s14 }
 0x973   : > { %1364 = vrot.lane.b32.xlu1 %v1353_v3, %s2703_s14  ;;  %v2526_v3 = vld [vmem:[%s2934_s13 + $0x18] sm:$0xff]  ;;  %s2705_s14 = smov [#allocation9]  }
 0x9b5   : > { %v1521_v29 = vpop.xlane.xlu1 %1520 }
 0x9b6   : > { %v1518_v61 = vpop.xlane.xlu0 %1517 }
 0x9ba   : > { %v1527_v30 = vpop.xlane.xlu1 %1526 }
 0x9be   : > { %v665_v2 = vpop.xlane.xlu1 %664  ;;  %v1524_v31 = vpop.xlane.xlu0 %1523 }
 0x9bf   : > { %2508 = vrcp.f32 %v665_v2 }
 0x9c2   : > { %v671_v49 = vpop.xlane.xlu1 %670  ;;  %v662_v21 = vpop.xlane.xlu0 %661 }
 0x9c3   : > { %2510 = vrcp.f32 %v671_v49 }
 0x9c4   : > { %2512 = vrcp.f32 %v662_v21 }
 0x9c6   : > { %v668_v1 = vpop.xlane.xlu0 %667 }
 0x9c7   : > { %2514 = vrcp.f32 %v668_v1 }
 0x9c8   : > { %2516 = vrcp.f32 %v1521_v29 }
 0x9c9   : > { %v2509_v12 = vpop.eup %2508  ;;  %2518 = vrcp.f32 %v1518_v61  ;;  %v2527_v61 = vld [vmem:[%s2934_s13 + $0x10] sm:$0xff] }
 0x9ca   : > { %v786_v32 = vmul.f32 %v2509_v12, %v3045_v4  ;;  %2520 = vrcp.f32 %v1527_v30 }
 0x9cb   : > { %2522 = vrcp.f32 %v1524_v31 }
 0x9cc   : > { %790 = vst.msk [vmem:[#allocation2 + $0x8] sm:$0xff] %vm530_vm1, %v786_v32  ;;  %v1068_v7 = vpop.permute.xlu0 %1067 }
 0x9cd   : > { %v2511_v33 = vpop.eup %2510 }
 0x9ce   : > { %v2513_v10 = vpop.eup %2512  ;;  %v788_v34 = vmul.f32 %v2511_v33, %v3049_v8 }
 0x9cf   : > { %v785_v23 = vmul.f32 %v2513_v10, %v3047_v5 }
 0x9d0   : > { %792 = vst.msk [vmem:[#allocation2 + $0x18] sm:$0xff] %vm530_vm1, %v788_v34 }
 0x9d1   : > { %v2515_v35 = vpop.eup %2514  ;;  %789 = vst.msk [vmem:[#allocation2] sm:$0xff] %vm530_vm1, %v785_v23 }
 0x9d2   : > { %v787_v50 = vmul.f32 %v2515_v35, %v3051_v9  ;;  %1080 = vst.msk [vmem:[#allocation2] sm:$0xff] %vm1079_vm3, %v1068_v7  ;;  %v2517_v45 = vpop.eup %2516 }
 0x9d3   : > { %v2519_v47 = vpop.eup %2518 }
 0x9d4   : > { %791 = vst.msk [vmem:[#allocation2 + $0x10] sm:$0xff] %vm530_vm1, %v787_v50  ;;  %v2521_v54 = vpop.eup %2520 }
 0x9d5   : > { %v1070_v4 = vpop.permute.xlu1 %1069  ;;  %v2523_v57 = vpop.eup %2522 }
 0x9d6   : > { %1081 = vst.msk [vmem:[#allocation2 + $0x8] sm:$0xff] %vm1079_vm3, %v1070_v4 }
 0x9d9   : > { %v1359_v8 = vpop.permute.xlu1 %1358 }
 0x9da   : > { %1371 = vst.msk [vmem:[#allocation2] sm:$0xff] %vm1370_vm4, %v1359_v8 }
 0x9dd   : > { %v1361_v5 = vpop.permute.xlu1 %1360  ;;  %v1072_v22 = vpop.permute.xlu0 %1071 }
 0x9de   : > { %1372 = vst.msk [vmem:[#allocation2 + $0x8] sm:$0xff] %vm1370_vm4, %v1361_v5 }
 0x9df   : > { %1082 = vst.msk [vmem:[#allocation2 + $0x10] sm:$0xff] %vm1079_vm3, %v1072_v22 }
 0x9e1   : > { %v1074_v36 = vpop.permute.xlu1 %1073  ;;  %v1363_v37 = vpop.permute.xlu0 %1362 }
 0x9e2   : > { %1083 = vst.msk [vmem:[#allocation2 + $0x18] sm:$0xff] %vm1079_vm3, %v1074_v36 }
 0x9e3   : > { %1373 = vst.msk [vmem:[#allocation2 + $0x10] sm:$0xff] %vm1370_vm4, %v1363_v37 }
 0x9e5   : > { %v1365_v9 = vpop.permute.xlu1 %1364 }
 0x9e6   : > { %1374 = vst.msk [vmem:[#allocation2 + $0x18] sm:$0xff] %vm1370_vm4, %v1365_v9 }
 0xa05   : > { %v2174_v46 = vpop.f32.mrb[12].mxu1 }
 0xa06   : > { %v1642_v48 = vmul.f32 %v2517_v45, %v2174_v46  ;;  %v1622_v51 = vpop.f32.mrb[13].mxu1 }
 0xa07   : > { %v1641_v52 = vmul.f32 %v2519_v47, %v1622_v51 }
 0xa08   : > { %1651 = vrot.lane.b32.xlu1 %v1642_v48, %s2704_s21 }
 0xa09   : > { %1649 = vrot.lane.b32.xlu0 %v1641_v52, %s2704_s21  ;;  %v2177_v56 = vpop.f32.mrb[14].mxu1 }
 0xa0a   : > { %v1644_v58 = vmul.f32 %v2521_v54, %v2177_v56  ;;  %v1632_v60 = vpop.f32.mrb[15].mxu1 }
 0xa0b   : > { %v1643_v13 = vmul.f32 %v2523_v57, %v1632_v60 }
 0xa0c   : > { %1655 = vrot.lane.b32.xlu1 %v1644_v58, %s2704_s21 }
 0xa0d   : > { %1653 = vrot.lane.b32.xlu0 %v1643_v13, %s2704_s21  ;;  %s2618_s21 = sshll.u32 %s2705_s14, 4  ;;  %s2619_s21 = int_to_ptr.vmem [resolvable:$false] %s2618_s21 }
 0xa0e   : > { %s2620_s13 = scalar_lea.vmem %s2619_s21, 1024  ;;  %p2621_p7 = scmp.lt.s32.totalorder %s3213_s9, %s2619_s21 }
 0xa0f   : > { %p2622_p9 = scmp.lt.s32.totalorder %s2620_s13, %s2614_s15 }
 0xa11   : > { %p2623_p12 = por %p2622_p9, %p2621_p7 }
 0xa13   : > { %p2624_p1 = pnand %p2623_p12, %p2617_p3 }
 0xa7a   : > { %v1652_v15 = vpop.permute.xlu1 %1651 }
 0xa7b   : > { %1663 = vst.msk [vmem:[#allocation2 + $0x8] sm:$0xff] %vm1661_vm5, %v1652_v15  ;;  %v1650_v14 = vpop.permute.xlu0 %1649 }
 0xa7c   : > { %1662 = vst.msk [vmem:[#allocation2] sm:$0xff] %vm1661_vm5, %v1650_v14 }
 0xa7e   : > { %v1656_v16 = vpop.permute.xlu1 %1655 }
 0xa7f   : > { %1665 = vst.msk [vmem:[#allocation2 + $0x18] sm:$0xff] %vm1661_vm5, %v1656_v16  ;;  %v1654_v62 = vpop.permute.xlu0 %1653 }
 0xa80   : > { %1664 = vst.msk [vmem:[#allocation2 + $0x10] sm:$0xff] %vm1661_vm5, %v1654_v62 }
 0xa82   : > { %v1667_v17 = vld [vmem:[#allocation2 + $0x8] sm:$0xff] }
 0xa83   : > { %v1666_v55 = vld [vmem:[#allocation2] sm:$0xff] }
 0xa84   : > { %2186 = vmatprep.mubr.msk.f32.mxu1 %vm330_vm0, %v1666_v55 }
 0xa85   : > { %2187 = vmatmul.mubr.msk.f32.vlgmr.msra.gmra.mrb[16].mxu1 %vm330_vm0, %v1667_v17 }
 0xa86   : > { %v1669_v59 = vld [vmem:[#allocation2 + $0x18] sm:$0xff] }
 0xa87   : > { %v1668_v18 = vld [vmem:[#allocation2 + $0x10] sm:$0xff] }
 0xa88   : > { %2189 = vmatprep.mubr.msk.f32.mxu1 %vm330_vm0, %v1668_v18 }
 0xa89   : > { %2190 = vmatmul.mubr.msk.f32.gmra.mrb[18].mxu1 %vm330_vm0, %v1669_v59 }
 0xb58   : > { %v2188_v20 = vpop.f32.mrb[16].mxu1 }
 0xb59   : > { %v1765_v24 = vadd.f32 %v2188_v20, %v1960_v19  ;;  %v1759_v0 = vpop.f32.mrb[17].mxu1 }
 0xb5a   : > { %v1760_v25 = vadd.f32 %v1960_v19, %v1759_v0 }
 0xb5b   : > { %v1779_v27 = vadd.f32 %v2524_v26, %v1765_v24 }
 0xb5c   : > { %v1778_v6 = vadd.f32 %v2525_v28, %v1760_v25  ;;  %v2191_v63 = vpop.f32.mrb[18].mxu1 }
 0xb5d   : > { %1783 = vst.msk [vmem:[%s325_s30 + $0x8] sm:$0xff] %vm330_vm0, %v1779_v27  ;;  %v1775_v11 = vadd.f32 %v2191_v63, %v1960_v19  ;;  %v1769_v42 = vpop.f32.mrb[19].mxu1 }
 0xb5e   : > { %1782 = vst.msk [vmem:[%s325_s30] sm:$0xff] %vm330_vm0, %v1778_v6  ;;  %v1770_v53 = vadd.f32 %v1960_v19, %v1769_v42 }
 0xb5f   : > { %v1781_v29 = vadd.f32 %v2526_v3, %v1775_v11 }
 0xb60   : > { %v1780_v30 = vadd.f32 %v2527_v61, %v1770_v53 }
 0xb61   : > { %1785 = vst.msk [vmem:[%s325_s30 + $0x18] sm:$0xff] %vm330_vm0, %v1781_v29 }
 0xb62   : > { %1784 = vst.msk [vmem:[%s325_s30 + $0x10] sm:$0xff] %vm330_vm0, %v1780_v30 }
 0xb63   : > { %2627 = shalt.err (!%p2624_p1)
}
 0xb64   : > { %s2628_s23 = scalar_lea.hbm %s3220_s10, 512  ;;  %s2632_s29 = scalar_lea.hbm %s3274_s7, 1024 }
 0xb65   : > { %p2629_p13 = scmp.ne.s32.totalorder %s3220_s10, %s2628_s23  ;;  %p2633_p4 = scmp.lt.u32.totalorder %s3220_s10, %s3274_s7 }
 0xb66   : > { %p2634_p5 = scmp.lt.u32.totalorder %s2632_s29, %s2628_s23  ;;  %p2636_p11 = scmp.lt.u32.totalorder %s2628_s23, %s3220_s10 }
 0xb67   : > { %p2630_p6 = pnand %p2629_p13, %p3292_p0 }
 0xb68   : > { %p2635_p8 = por %p2634_p5, %p2633_p4 }
 0xb69   : > { %p2631_p10 = pneg %p2630_p6 }
 0xb6a   : > { %p2637_p2 = por %p2636_p11, %p2635_p8 }
 0xb6c   : > { %p2638_p3 = pnand %p2637_p2, %p2631_p10 }
 0xb6e   : > { %2641 = shalt.err (!%p2638_p3)
}
 0xb6f   : > { %s2706_s15 = smov 128  }
 0xb70   : > { %2298 = dma.vmem_to_hbm [thread:$0]  (%p3292_p0), %s3213_s9, 512, %s3220_s10, %s1787_s28, %s2706_s15, %s2706_s15, %s2702_s19  }
 0xb71 PF: > { %s1815_s14 = sand.u32 1, %s2672_s24   ;;  %p3293_p7 = scmp.ne.s32.totalorder %s3280_s8, 0 }
 0xb72   : > { %p3294_p9 = scmp.ge.s32.totalorder %s2684_s27, 2  ;;  %s1816_s21 = scalar_lea.sflag [#allocation5], %s1815_s14 }
 0xb74   : > { %p2312_p12 = pnand %p3294_p9, %p3293_p7 }
 0xb76   : > { %2667 = dma.done.wait (!%p2312_p12), %s1816_s21, 512  }
 0xb77   : > { %2669 = vsyncadd (!%p2312_p12), %s1816_s21, 4294966784  ;;  %p21_p1 = scmp.ge.s32.totalorder %s2863_s12, 4   ;;  %s3295_s24 = smov %s2676_s25 }
 0xb78   : > { %s3296_s25 = smov %s2680_s26  ;;  %s3297_s26 = smov %s2879_s17 }
 0xb79   : > { %s3298_s27 = smov %s2863_s12  ;;  %23 = sbr.rel (!%p21_p1) target bundleno = 6 (0x6), region = 101 }
 0xb80   :  { %1821 = vsyncpa [#allocation4], 1 }
 0xb81   :  { %1823 = vsyncpa [#allocation4 + $0x1], 1 }
 0xb82   :  { %1824 = vsyncpa [#allocation7], 1 }
 0xb83   :  { %1825 = vsyncpa [#allocation5], 1 }
 0xb84   :  { %1827 = vsyncpa [#allocation5 + $0x1], 1 }

</bundles_post_ra>
